<compile_context>
chip_gen: v6e
topology: v6e:2x2x1
jax: 0.10.0
libtpu: 0.0.40
codegen_flags: <defaults>
</compile_context>

<pallas_src>
import numpy as np
import jax
import jax.numpy as jnp
from jax.experimental import pallas as pl
from jax.experimental.pallas import tpu as pltpu

HIDDEN = 512  # hardcoded in mlp_fn; ctor arg `h` is unused (matches torch)


# ----------------------------- fused kernel -------------------------------- #

def _fused_kernel(src_ref, dst_ref, x_ref, a_ref,
                  ew1s, ew1d, eb1, ew2, eb2, ew3, eb3,
                  nw1x, nw1a, nw1e, nb1, nw2, nb2, nw3, nb3,
                  o_ref):
    f32, bf16 = jnp.float32, jnp.bfloat16
    tn = o_ref.shape[0]
    km1 = src_ref.shape[0] // tn          # K - 1 edges per node

    # ---- edge MLP over the K-1 directed edges of each node in the tile ----
    # first layer: concat([src, dst]) @ w1  ==  src @ w1[:z] + dst @ w1[z:]
    h = jnp.dot(src_ref[...], ew1s[...], preferred_element_type=f32)
    h = h + jnp.dot(dst_ref[...], ew1d[...], preferred_element_type=f32)
    h = jnp.maximum(h + eb1[...], 0.0).astype(bf16)
    h = jnp.dot(h, ew2[...], preferred_element_type=f32) + eb2[...]
    h = jnp.maximum(h, 0.0)
    # linearity: segment-sum the post-ReLU hidden over each node's K-1 edges,
    # then ONE (tn,512)@(512,z) matmul; bias becomes (K-1)*b3.
    h = jnp.sum(h.reshape(tn, km1, h.shape[-1]), axis=1).astype(bf16)
    e_agg = jnp.dot(h, ew3[...], preferred_element_type=f32) + km1 * eb3[...]

    # ---- node MLP on concat([x, a, e_agg]) via a split first layer ----
    g = jnp.dot(x_ref[...], nw1x[...], preferred_element_type=f32)
    g = g + jnp.dot(a_ref[...], nw1a[...], preferred_element_type=f32)
    g = g + jnp.dot(e_agg.astype(bf16), nw1e[...], preferred_element_type=f32)
    g = jnp.maximum(g + nb1[...], 0.0).astype(bf16)
    g = jnp.dot(g, nw2[...], preferred_element_type=f32) + nb2[...]
    g = jnp.maximum(g, 0.0).astype(bf16)
    # nw3/nb3 are zero-padded to a lane-dense (>=128) output width
    o_ref[...] = jnp.dot(g, nw3[...], preferred_element_type=f32) + nb3[...]


# --------------------------- wrapper / tiling ------------------------------- #

def _edge_index(K):
    I = np.arange(K)
    ii, jj = np.meshgrid(I, I, indexing="ij")       # torch.meshgrid default 'ij'
    ei = np.stack([ii, jj], -1).reshape(-1, 2)
    return ei[ei[:, 0] != ei[:, 1]]                 # (K*(K-1), 2), i-major


def _choose_tile_nodes(n_nodes, K, target_edge_rows=1024, max_edge_rows=2048):
    """Pick tile_nodes: multiple of 8 dividing n_nodes, edge rows near target,
    capped for VMEM, preferring >=2 grid steps (v7x megacore)."""
    km1 = max(K - 1, 1)
    cands = [t for t in range(8, n_nodes + 1, 8) if n_nodes % t == 0]
    if not cands:
        return n_nodes  # block == full array dims is always legal

    def score(t):
        rows = t * km1
        return (rows > max_edge_rows,            # don't blow VMEM
                (n_nodes // t) < 2,              # keep both TensorCores busy
                abs(rows - target_edge_rows))    # feed the MXU a big M
    return min(cands, key=score)


def gnn1_forward(x, a, edge_params, node_params, K, tile_nodes=None):
    """x: (B, K, zdim), a: (B, K, adim) -> (B, K, zdim). f32 in/out."""
    B, K_, z = x.shape
    assert K_ == K
    adim = a.shape[-1]
    km1 = K - 1
    n_nodes = B * K
    tn = _choose_tile_nodes(n_nodes, K) if tile_nodes is None else tile_nodes
    assert n_nodes % tn == 0
    grid = (n_nodes // tn,)

    # lane-dense padded output width (stores become unmasked vst)
    outp = z if z % 128 == 0 else ((z + 127) // 128) * 128

    # --- glue (plain JAX): edge endpoint gather + flatten, cast to bf16 ---
    # TODO(synk): the (B*K*(K-1), z) endpoint gather could be built in-kernel
    # from a per-batch x DMA; weights dominate traffic so it's left in XLA.
    ei = _edge_index(K)
    xb = x.astype(jnp.bfloat16)
    src = xb[:, ei[:, 0], :].reshape(n_nodes * km1, z)
    dst = xb[:, ei[:, 1], :].reshape(n_nodes * km1, z)
    xn = xb.reshape(n_nodes, z)
    an = a.astype(jnp.bfloat16).reshape(n_nodes, adim)

    # --- split / cast / pad weights (bf16 matmul inputs, f32 biases) ---
    ew1 = edge_params["w1"]
    ew1s = ew1[:z].astype(jnp.bfloat16)
    ew1d = ew1[z:].astype(jnp.bfloat16)
    eb1 = edge_params["b1"].astype(jnp.float32)
    ew2 = edge_params["w2"].astype(jnp.bfloat16)
    eb2 = edge_params["b2"].astype(jnp.float32)
    ew3 = edge_params["w3"].astype(jnp.bfloat16)
    eb3 = edge_params["b3"].astype(jnp.float32)

    nw1 = node_params["w1"]
    nw1x = nw1[:z].astype(jnp.bfloat16)
    nw1a = nw1[z:z + adim].astype(jnp.bfloat16)
    nw1e = nw1[z + adim:].astype(jnp.bfloat16)
    nb1 = node_params["b1"].astype(jnp.float32)
    nw2 = node_params["w2"].astype(jnp.bfloat16)
    nb2 = node_params["b2"].astype(jnp.float32)
    nw3 = node_params["w3"].astype(jnp.bfloat16)
    nb3 = node_params["b3"].astype(jnp.float32)
    if outp != z:
        nw3 = jnp.pad(nw3, ((0, 0), (0, outp - z)))
        nb3 = jnp.pad(nb3, ((0, 0), (0, outp - z)))

    weight_vals = [ew1s, ew1d, eb1, ew2, eb2, ew3, eb3,
                   nw1x, nw1a, nw1e, nb1, nw2, nb2, nw3, nb3]
    # weights are grid-invariant (index_map == (0,0)); Pallas fetches them once
    weight_specs = [pl.BlockSpec(w.shape, lambda i: (0, 0)) for w in weight_vals]

    in_specs = [
        pl.BlockSpec((tn * km1, z), lambda i: (i, 0)),   # src endpoints
        pl.BlockSpec((tn * km1, z), lambda i: (i, 0)),   # dst endpoints
        pl.BlockSpec((tn, z), lambda i: (i, 0)),         # x
        pl.BlockSpec((tn, adim), lambda i: (i, 0)),      # a
    ] + weight_specs

    # advisory cost estimate for the XLA scheduler
    flops = (2 * n_nodes * km1 * (2 * z * HIDDEN + HIDDEN * HIDDEN)
             + 2 * n_nodes * HIDDEN * z
             + 2 * n_nodes * ((2 * z + adim) * HIDDEN + HIDDEN * HIDDEN
                              + HIDDEN * outp))
    bytes_accessed = ((src.size + dst.size + xn.size + an.size) * 2
                      + sum(int(w.size) * w.dtype.itemsize for w in weight_vals)
                      + n_nodes * outp * 4)

    out_pad = pl.pallas_call(
        _fused_kernel,
        out_shape=jax.ShapeDtypeStruct((n_nodes, outp), jnp.float32),
        grid_spec=pltpu.PrefetchScalarGridSpec(
            num_scalar_prefetch=0,
            grid=grid,
            in_specs=in_specs,
            out_specs=pl.BlockSpec((tn, outp), lambda i: (i, 0)),
        ),
        compiler_params=pltpu.CompilerParams(
            dimension_semantics=("parallel",),
            vmem_limit_bytes=32 * 1024 * 1024,
        ),
        cost_estimate=pl.CostEstimate(flops=flops, transcendentals=0,
                                      bytes_accessed=bytes_accessed),
    )(src, dst, xn, an, *weight_vals)

    return out_pad[:, :z].reshape(B, K, z)


# ------------------------ params + pure-JAX reference ---------------------- #

def init_mlp(key, sizes):
    """PyTorch-style Linear init: U(-1/sqrt(fan_in), 1/sqrt(fan_in))."""
    params = {}
    for i, (fin, fout) in enumerate(zip(sizes[:-1], sizes[1:]), start=1):
        key, kw, kb = jax.random.split(key, 3)
        bound = float(1.0 / np.sqrt(fin))
        params[f"w{i}"] = jax.random.uniform(kw, (fin, fout), jnp.float32,
                                             -bound, bound)
        params[f"b{i}"] = jax.random.uniform(kb, (1, fout), jnp.float32,
                                             -bound, bound)
    return params


def _mlp3_ref(x, p):
    h = jax.nn.relu(x @ p["w1"] + p["b1"])
    h = jax.nn.relu(h @ p["w2"] + p["b2"])
    return h @ p["w3"] + p["b3"]


def gnn1_reference(x, a, edge_params, node_params, K):
    """Full-precision (f32) reference matching the torch module."""
    B, _, z = x.shape
    ei = _edge_index(K)
    e = jnp.concatenate([x[:, ei[:, 0], :], x[:, ei[:, 1], :]], -1)
    e = _mlp3_ref(e.reshape(-1, 2 * z), edge_params)
    e = e.reshape(B, K, K - 1, z).sum(2)
    n_in = jnp.concatenate([x, a, e], -1).reshape(B * K, -1)
    return _mlp3_ref(n_in, node_params).reshape(B, K, z)


# ----------------------------------- main ---------------------------------- #

if __name__ == "__main__":
    B, K, ZDIM, ADIM, H = 4, 4, 16, 8, 32   # H unused, as in the torch module

    key = jax.random.PRNGKey(0)
    k_edge, k_node, kx, ka = jax.random.split(key, 4)
    edge_params = init_mlp(k_edge, [2 * ZDIM, HIDDEN, HIDDEN, ZDIM])
    node_params = init_mlp(k_node, [2 * ZDIM + ADIM, HIDDEN, HIDDEN, ZDIM])

    x = jax.random.normal(kx, (B, K, ZDIM), jnp.float32)
    a = jax.random.normal(ka, (B, K, ADIM), jnp.float32)

    fwd = jax.jit(gnn1_forward, static_argnames=("K", "tile_nodes"))
    out = jax.block_until_ready(fwd(x, a, edge_params, node_params, K=K))
    assert out.shape == (B, K, ZDIM)

    ref = gnn1_reference(x, a, edge_params, node_params, K)
    # bf16 matmuls with f32 accumulation -> tolerance loosened vs pure f32
    np.testing.assert_allclose(np.asarray(out), np.asarray(ref),
                               atol=5e-2, rtol=5e-2)
    print("KERNEL_OK")
</pallas_src>

<mosaic_0001>
module attributes {stable_mosaic.version = 11 : i64} {
  func.func @_fused_kernel(%arg0: i32, %arg1: memref<24x16xbf16, #tpu.memory_space<vmem>>, %arg2: memref<24x16xbf16, #tpu.memory_space<vmem>>, %arg3: memref<8x16xbf16, #tpu.memory_space<vmem>>, %arg4: memref<8x8xbf16, #tpu.memory_space<vmem>>, %arg5: memref<16x512xbf16, #tpu.memory_space<vmem>>, %arg6: memref<16x512xbf16, #tpu.memory_space<vmem>>, %arg7: memref<1x512xf32, #tpu.memory_space<vmem>>, %arg8: memref<512x512xbf16, #tpu.memory_space<vmem>>, %arg9: memref<1x512xf32, #tpu.memory_space<vmem>>, %arg10: memref<512x16xbf16, #tpu.memory_space<vmem>>, %arg11: memref<1x16xf32, #tpu.memory_space<vmem>>, %arg12: memref<16x512xbf16, #tpu.memory_space<vmem>>, %arg13: memref<8x512xbf16, #tpu.memory_space<vmem>>, %arg14: memref<16x512xbf16, #tpu.memory_space<vmem>>, %arg15: memref<1x512xf32, #tpu.memory_space<vmem>>, %arg16: memref<512x512xbf16, #tpu.memory_space<vmem>>, %arg17: memref<1x512xf32, #tpu.memory_space<vmem>>, %arg18: memref<512x128xbf16, #tpu.memory_space<vmem>>, %arg19: memref<1x128xf32, #tpu.memory_space<vmem>>, %arg20: memref<8x128xf32, #tpu.memory_space<vmem>>) attributes {dimension_semantics = [#tpu.dimension_semantics<parallel>], iteration_bounds = array<i64: 2>, scalar_prefetch = 0 : i64, scratch_operands = 0 : i64, tpu.core_type = #tpu.core_type<tc>, window_params = [{transform_indices = @transform_0, window_bounds = array<i64: 24, 16>}, {transform_indices = @transform_1, window_bounds = array<i64: 24, 16>}, {transform_indices = @transform_2, window_bounds = array<i64: 8, 16>}, {transform_indices = @transform_3, window_bounds = array<i64: 8, 8>}, {pipeline_mode = #tpu.pipeline_mode<synchronous>, transform_indices = @transform_4, window_bounds = array<i64: 16, 512>}, {pipeline_mode = #tpu.pipeline_mode<synchronous>, transform_indices = @transform_5, window_bounds = array<i64: 16, 512>}, {pipeline_mode = #tpu.pipeline_mode<synchronous>, transform_indices = @transform_6, window_bounds = array<i64: 1, 512>}, {pipeline_mode = #tpu.pipeline_mode<synchronous>, transform_indices = @transform_7, window_bounds = array<i64: 512, 512>}, {pipeline_mode = #tpu.pipeline_mode<synchronous>, transform_indices = @transform_8, window_bounds = array<i64: 1, 512>}, {pipeline_mode = #tpu.pipeline_mode<synchronous>, transform_indices = @transform_9, window_bounds = array<i64: 512, 16>}, {pipeline_mode = #tpu.pipeline_mode<synchronous>, transform_indices = @transform_10, window_bounds = array<i64: 1, 16>}, {pipeline_mode = #tpu.pipeline_mode<synchronous>, transform_indices = @transform_11, window_bounds = array<i64: 16, 512>}, {pipeline_mode = #tpu.pipeline_mode<synchronous>, transform_indices = @transform_12, window_bounds = array<i64: 8, 512>}, {pipeline_mode = #tpu.pipeline_mode<synchronous>, transform_indices = @transform_13, window_bounds = array<i64: 16, 512>}, {pipeline_mode = #tpu.pipeline_mode<synchronous>, transform_indices = @transform_14, window_bounds = array<i64: 1, 512>}, {pipeline_mode = #tpu.pipeline_mode<synchronous>, transform_indices = @transform_15, window_bounds = array<i64: 512, 512>}, {pipeline_mode = #tpu.pipeline_mode<synchronous>, transform_indices = @transform_16, window_bounds = array<i64: 1, 512>}, {pipeline_mode = #tpu.pipeline_mode<synchronous>, transform_indices = @transform_17, window_bounds = array<i64: 512, 128>}, {pipeline_mode = #tpu.pipeline_mode<synchronous>, transform_indices = @transform_18, window_bounds = array<i64: 1, 128>}, {transform_indices = @transform_19, window_bounds = array<i64: 8, 128>}]} {
    %c0 = arith.constant 0 : index
    %c0_0 = arith.constant 0 : index
    %0 = vector.load %arg1[%c0, %c0_0] : memref<24x16xbf16, #tpu.memory_space<vmem>>, vector<24x16xbf16>
    %c0_1 = arith.constant 0 : index
    %c0_2 = arith.constant 0 : index
    %1 = vector.load %arg5[%c0_1, %c0_2] : memref<16x512xbf16, #tpu.memory_space<vmem>>, vector<16x512xbf16>
    %cst = arith.constant dense<0.000000e+00> : vector<24x512xf32>
    %2 = tpu.matmul %0, %1, %cst {dimension_numbers = #tpu.dot_dimension_numbers<[1], [0], [0], [1], [0, 0, 1, 1], [], []>} : vector<24x16xbf16>, vector<16x512xbf16>, vector<24x512xf32> -> vector<24x512xf32>
    %c0_3 = arith.constant 0 : index
    %c0_4 = arith.constant 0 : index
    %3 = vector.load %arg2[%c0_3, %c0_4] : memref<24x16xbf16, #tpu.memory_space<vmem>>, vector<24x16xbf16>
    %c0_5 = arith.constant 0 : index
    %c0_6 = arith.constant 0 : index
    %4 = vector.load %arg6[%c0_5, %c0_6] : memref<16x512xbf16, #tpu.memory_space<vmem>>, vector<16x512xbf16>
    %cst_7 = arith.constant dense<0.000000e+00> : vector<24x512xf32>
    %5 = tpu.matmul %3, %4, %cst_7 {dimension_numbers = #tpu.dot_dimension_numbers<[1], [0], [0], [1], [0, 0, 1, 1], [], []>} : vector<24x16xbf16>, vector<16x512xbf16>, vector<24x512xf32> -> vector<24x512xf32>
    %6 = arith.addf %2, %5 : vector<24x512xf32>
    %c0_8 = arith.constant 0 : index
    %c0_9 = arith.constant 0 : index
    %7 = vector.load %arg7[%c0_8, %c0_9] : memref<1x512xf32, #tpu.memory_space<vmem>>, vector<1x512xf32>
    %8 = vector.broadcast %7 : vector<1x512xf32> to vector<24x512xf32>
    %9 = arith.addf %6, %8 : vector<24x512xf32>
    %cst_10 = arith.constant 0.000000e+00 : f32
    %10 = vector.broadcast %cst_10 : f32 to vector<24x512xf32>
    %11 = arith.maximumf %9, %10 : vector<24x512xf32>
    %12 = arith.truncf %11 : vector<24x512xf32> to vector<24x512xbf16>
    %c0_11 = arith.constant 0 : index
    %c0_12 = arith.constant 0 : index
    %13 = vector.load %arg8[%c0_11, %c0_12] : memref<512x512xbf16, #tpu.memory_space<vmem>>, vector<512x512xbf16>
    %cst_13 = arith.constant dense<0.000000e+00> : vector<24x512xf32>
    %14 = tpu.matmul %12, %13, %cst_13 {dimension_numbers = #tpu.dot_dimension_numbers<[1], [0], [0], [1], [0, 0, 1, 1], [], []>} : vector<24x512xbf16>, vector<512x512xbf16>, vector<24x512xf32> -> vector<24x512xf32>
    %c0_14 = arith.constant 0 : index
    %c0_15 = arith.constant 0 : index
    %15 = vector.load %arg9[%c0_14, %c0_15] : memref<1x512xf32, #tpu.memory_space<vmem>>, vector<1x512xf32>
    %16 = vector.broadcast %15 : vector<1x512xf32> to vector<24x512xf32>
    %17 = arith.addf %14, %16 : vector<24x512xf32>
    %cst_16 = arith.constant 0.000000e+00 : f32
    %18 = vector.broadcast %cst_16 : f32 to vector<24x512xf32>
    %19 = arith.maximumf %17, %18 : vector<24x512xf32>
    %20 = vector.shape_cast %19 : vector<24x512xf32> to vector<8x3x512xf32>
    %cst_17 = arith.constant dense<0.000000e+00> : vector<8x512xf32>
    %21 = vector.multi_reduction <add>, %20, %cst_17 [1] : vector<8x3x512xf32> to vector<8x512xf32>
    %22 = arith.truncf %21 : vector<8x512xf32> to vector<8x512xbf16>
    %c0_18 = arith.constant 0 : index
    %c0_19 = arith.constant 0 : index
    %23 = vector.load %arg10[%c0_18, %c0_19] : memref<512x16xbf16, #tpu.memory_space<vmem>>, vector<512x16xbf16>
    %cst_20 = arith.constant dense<0.000000e+00> : vector<8x16xf32>
    %24 = tpu.matmul %22, %23, %cst_20 {dimension_numbers = #tpu.dot_dimension_numbers<[1], [0], [0], [1], [0, 0, 1, 1], [], []>} : vector<8x512xbf16>, vector<512x16xbf16>, vector<8x16xf32> -> vector<8x16xf32>
    %c0_21 = arith.constant 0 : index
    %c0_22 = arith.constant 0 : index
    %25 = vector.load %arg11[%c0_21, %c0_22] : memref<1x16xf32, #tpu.memory_space<vmem>>, vector<1x16xf32>
    %cst_23 = arith.constant 3.000000e+00 : f32
    %26 = vector.broadcast %cst_23 : f32 to vector<1x16xf32>
    %27 = arith.mulf %26, %25 : vector<1x16xf32>
    %28 = vector.broadcast %27 : vector<1x16xf32> to vector<8x16xf32>
    %29 = arith.addf %24, %28 : vector<8x16xf32>
    %c0_24 = arith.constant 0 : index
    %c0_25 = arith.constant 0 : index
    %30 = vector.load %arg3[%c0_24, %c0_25] : memref<8x16xbf16, #tpu.memory_space<vmem>>, vector<8x16xbf16>
    %c0_26 = arith.constant 0 : index
    %c0_27 = arith.constant 0 : index
    %31 = vector.load %arg12[%c0_26, %c0_27] : memref<16x512xbf16, #tpu.memory_space<vmem>>, vector<16x512xbf16>
    %cst_28 = arith.constant dense<0.000000e+00> : vector<8x512xf32>
    %32 = tpu.matmul %30, %31, %cst_28 {dimension_numbers = #tpu.dot_dimension_numbers<[1], [0], [0], [1], [0, 0, 1, 1], [], []>} : vector<8x16xbf16>, vector<16x512xbf16>, vector<8x512xf32> -> vector<8x512xf32>
    %c0_29 = arith.constant 0 : index
    %c0_30 = arith.constant 0 : index
    %33 = vector.load %arg4[%c0_29, %c0_30] : memref<8x8xbf16, #tpu.memory_space<vmem>>, vector<8x8xbf16>
    %c0_31 = arith.constant 0 : index
    %c0_32 = arith.constant 0 : index
    %34 = vector.load %arg13[%c0_31, %c0_32] : memref<8x512xbf16, #tpu.memory_space<vmem>>, vector<8x512xbf16>
    %cst_33 = arith.constant dense<0.000000e+00> : vector<8x512xf32>
    %35 = tpu.matmul %33, %34, %cst_33 {dimension_numbers = #tpu.dot_dimension_numbers<[1], [0], [0], [1], [0, 0, 1, 1], [], []>} : vector<8x8xbf16>, vector<8x512xbf16>, vector<8x512xf32> -> vector<8x512xf32>
    %36 = arith.addf %32, %35 : vector<8x512xf32>
    %37 = arith.truncf %29 : vector<8x16xf32> to vector<8x16xbf16>
    %c0_34 = arith.constant 0 : index
    %c0_35 = arith.constant 0 : index
    %38 = vector.load %arg14[%c0_34, %c0_35] : memref<16x512xbf16, #tpu.memory_space<vmem>>, vector<16x512xbf16>
    %cst_36 = arith.constant dense<0.000000e+00> : vector<8x512xf32>
    %39 = tpu.matmul %37, %38, %cst_36 {dimension_numbers = #tpu.dot_dimension_numbers<[1], [0], [0], [1], [0, 0, 1, 1], [], []>} : vector<8x16xbf16>, vector<16x512xbf16>, vector<8x512xf32> -> vector<8x512xf32>
    %40 = arith.addf %36, %39 : vector<8x512xf32>
    %c0_37 = arith.constant 0 : index
    %c0_38 = arith.constant 0 : index
    %41 = vector.load %arg15[%c0_37, %c0_38] : memref<1x512xf32, #tpu.memory_space<vmem>>, vector<1x512xf32>
    %42 = vector.broadcast %41 : vector<1x512xf32> to vector<8x512xf32>
    %43 = arith.addf %40, %42 : vector<8x512xf32>
    %cst_39 = arith.constant 0.000000e+00 : f32
    %44 = vector.broadcast %cst_39 : f32 to vector<8x512xf32>
    %45 = arith.maximumf %43, %44 : vector<8x512xf32>
    %46 = arith.truncf %45 : vector<8x512xf32> to vector<8x512xbf16>
    %c0_40 = arith.constant 0 : index
    %c0_41 = arith.constant 0 : index
    %47 = vector.load %arg16[%c0_40, %c0_41] : memref<512x512xbf16, #tpu.memory_space<vmem>>, vector<512x512xbf16>
    %cst_42 = arith.constant dense<0.000000e+00> : vector<8x512xf32>
    %48 = tpu.matmul %46, %47, %cst_42 {dimension_numbers = #tpu.dot_dimension_numbers<[1], [0], [0], [1], [0, 0, 1, 1], [], []>} : vector<8x512xbf16>, vector<512x512xbf16>, vector<8x512xf32> -> vector<8x512xf32>
    %c0_43 = arith.constant 0 : index
    %c0_44 = arith.constant 0 : index
    %49 = vector.load %arg17[%c0_43, %c0_44] : memref<1x512xf32, #tpu.memory_space<vmem>>, vector<1x512xf32>
    %50 = vector.broadcast %49 : vector<1x512xf32> to vector<8x512xf32>
    %51 = arith.addf %48, %50 : vector<8x512xf32>
    %cst_45 = arith.constant 0.000000e+00 : f32
    %52 = vector.broadcast %cst_45 : f32 to vector<8x512xf32>
    %53 = arith.maximumf %51, %52 : vector<8x512xf32>
    %54 = arith.truncf %53 : vector<8x512xf32> to vector<8x512xbf16>
    %c0_46 = arith.constant 0 : index
    %c0_47 = arith.constant 0 : index
    %55 = vector.load %arg18[%c0_46, %c0_47] : memref<512x128xbf16, #tpu.memory_space<vmem>>, vector<512x128xbf16>
    %cst_48 = arith.constant dense<0.000000e+00> : vector<8x128xf32>
    %56 = tpu.matmul %54, %55, %cst_48 {dimension_numbers = #tpu.dot_dimension_numbers<[1], [0], [0], [1], [0, 0, 1, 1], [], []>} : vector<8x512xbf16>, vector<512x128xbf16>, vector<8x128xf32> -> vector<8x128xf32>
    %c0_49 = arith.constant 0 : index
    %c0_50 = arith.constant 0 : index
    %57 = vector.load %arg19[%c0_49, %c0_50] : memref<1x128xf32, #tpu.memory_space<vmem>>, vector<1x128xf32>
    %58 = vector.broadcast %57 : vector<1x128xf32> to vector<8x128xf32>
    %59 = arith.addf %56, %58 : vector<8x128xf32>
    %c0_51 = arith.constant 0 : index
    %c0_52 = arith.constant 0 : index
    %60 = vector.load %arg20[%c0_51, %c0_52] : memref<8x128xf32, #tpu.memory_space<vmem>>, vector<8x128xf32>
    tpu.vector_store %arg20[%c0_51, %c0_52], %59 {strides = array<i32>} : memref<8x128xf32, #tpu.memory_space<vmem>>, vector<8x128xf32>,
    return
  }
  func.func @transform_0(%arg0: i32) -> (i32, i32) {
    %c0_i32 = arith.constant 0 : i32
    %c0_i32_0 = arith.constant 0 : i32
    return %arg0, %c0_i32 : i32, i32
  }
  func.func @transform_1(%arg0: i32) -> (i32, i32) {
    %c0_i32 = arith.constant 0 : i32
    %c0_i32_0 = arith.constant 0 : i32
    return %arg0, %c0_i32 : i32, i32
  }
  func.func @transform_2(%arg0: i32) -> (i32, i32) {
    %c0_i32 = arith.constant 0 : i32
    %c0_i32_0 = arith.constant 0 : i32
    return %arg0, %c0_i32 : i32, i32
  }
  func.func @transform_3(%arg0: i32) -> (i32, i32) {
    %c0_i32 = arith.constant 0 : i32
    %c0_i32_0 = arith.constant 0 : i32
    return %arg0, %c0_i32 : i32, i32
  }
  func.func @transform_4(%arg0: i32) -> (i32, i32) {
    %c0_i32 = arith.constant 0 : i32
    %c0_i32_0 = arith.constant 0 : i32
    %c0_i32_1 = arith.constant 0 : i32
    return %c0_i32, %c0_i32_0 : i32, i32
  }
  func.func @transform_5(%arg0: i32) -> (i32, i32) {
    %c0_i32 = arith.constant 0 : i32
    %c0_i32_0 = arith.constant 0 : i32
    %c0_i32_1 = arith.constant 0 : i32
    return %c0_i32, %c0_i32_0 : i32, i32
  }
  func.func @transform_6(%arg0: i32) -> (i32, i32) {
    %c0_i32 = arith.constant 0 : i32
    %c0_i32_0 = arith.constant 0 : i32
    %c0_i32_1 = arith.constant 0 : i32
    return %c0_i32, %c0_i32_0 : i32, i32
  }
  func.func @transform_7(%arg0: i32) -> (i32, i32) {
    %c0_i32 = arith.constant 0 : i32
    %c0_i32_0 = arith.constant 0 : i32
    %c0_i32_1 = arith.constant 0 : i32
    return %c0_i32, %c0_i32_0 : i32, i32
  }
  func.func @transform_8(%arg0: i32) -> (i32, i32) {
    %c0_i32 = arith.constant 0 : i32
    %c0_i32_0 = arith.constant 0 : i32
    %c0_i32_1 = arith.constant 0 : i32
    return %c0_i32, %c0_i32_0 : i32, i32
  }
  func.func @transform_9(%arg0: i32) -> (i32, i32) {
    %c0_i32 = arith.constant 0 : i32
    %c0_i32_0 = arith.constant 0 : i32
    %c0_i32_1 = arith.constant 0 : i32
    return %c0_i32, %c0_i32_0 : i32, i32
  }
  func.func @transform_10(%arg0: i32) -> (i32, i32) {
    %c0_i32 = arith.constant 0 : i32
    %c0_i32_0 = arith.constant 0 : i32
    %c0_i32_1 = arith.constant 0 : i32
    return %c0_i32, %c0_i32_0 : i32, i32
  }
  func.func @transform_11(%arg0: i32) -> (i32, i32) {
    %c0_i32 = arith.constant 0 : i32
    %c0_i32_0 = arith.constant 0 : i32
    %c0_i32_1 = arith.constant 0 : i32
    return %c0_i32, %c0_i32_0 : i32, i32
  }
  func.func @transform_12(%arg0: i32) -> (i32, i32) {
    %c0_i32 = arith.constant 0 : i32
    %c0_i32_0 = arith.constant 0 : i32
    %c0_i32_1 = arith.constant 0 : i32
    return %c0_i32, %c0_i32_0 : i32, i32
  }
  func.func @transform_13(%arg0: i32) -> (i32, i32) {
    %c0_i32 = arith.constant 0 : i32
    %c0_i32_0 = arith.constant 0 : i32
    %c0_i32_1 = arith.constant 0 : i32
    return %c0_i32, %c0_i32_0 : i32, i32
  }
  func.func @transform_14(%arg0: i32) -> (i32, i32) {
    %c0_i32 = arith.constant 0 : i32
    %c0_i32_0 = arith.constant 0 : i32
    %c0_i32_1 = arith.constant 0 : i32
    return %c0_i32, %c0_i32_0 : i32, i32
  }
  func.func @transform_15(%arg0: i32) -> (i32, i32) {
    %c0_i32 = arith.constant 0 : i32
    %c0_i32_0 = arith.constant 0 : i32
    %c0_i32_1 = arith.constant 0 : i32
    return %c0_i32, %c0_i32_0 : i32, i32
  }
  func.func @transform_16(%arg0: i32) -> (i32, i32) {
    %c0_i32 = arith.constant 0 : i32
    %c0_i32_0 = arith.constant 0 : i32
    %c0_i32_1 = arith.constant 0 : i32
    return %c0_i32, %c0_i32_0 : i32, i32
  }
  func.func @transform_17(%arg0: i32) -> (i32, i32) {
    %c0_i32 = arith.constant 0 : i32
    %c0_i32_0 = arith.constant 0 : i32
    %c0_i32_1 = arith.constant 0 : i32
    return %c0_i32, %c0_i32_0 : i32, i32
  }
  func.func @transform_18(%arg0: i32) -> (i32, i32) {
    %c0_i32 = arith.constant 0 : i32
    %c0_i32_0 = arith.constant 0 : i32
    %c0_i32_1 = arith.constant 0 : i32
    return %c0_i32, %c0_i32_0 : i32, i32
  }
  func.func @transform_19(%arg0: i32) -> (i32, i32) {
    %c0_i32 = arith.constant 0 : i32
    %c0_i32_0 = arith.constant 0 : i32
    return %arg0, %c0_i32 : i32, i32
  }
}

</mosaic_0001>

<bundles_post_ra>
// kernel: gnn1_forward.1
= control target key start
LH: loop header
LB: loop body
LE: loop exit
PB: predicated region body
PF: predicated region fallthrough
CT: control target
= control target key end

     0   :  { %s7729_s0 = inlined_call_operand.vmem [shape: bf16[48,16], index: 0, kind: input, shape index: {}]   ;;  %s7730_s1 = inlined_call_operand.vmem [shape: bf16[48,16], index: 1, kind: input, shape index: {}]   ;;  %s7731_s2 = inlined_call_operand.vmem [shape: bf16[16,16], index: 2, kind: input, shape index: {}]   ;;  %s7732_s3 = inlined_call_operand.vmem [shape: bf16[16,8], index: 3, kind: input, shape index: {}]   ;;  %s7733_s4 = inlined_call_operand.vmem [shape: bf16[16,512], index: 4, kind: input, shape index: {}]   ;;  %s7734_s5 = inlined_call_operand.vmem [shape: bf16[16,512], index: 5, kind: input, shape index: {}]   ;;  %s7735_s6 = inlined_call_operand.vmem [shape: f32[1,512], index: 6, kind: input, shape index: {}]   ;;  %s7736_s7 = inlined_call_operand.vmem [shape: bf16[512,512], index: 7, kind: input, shape index: {}]   ;;  %s7737_s8 = inlined_call_operand.vmem [shape: f32[1,512], index: 8, kind: input, shape index: {}]   ;;  %s7738_s9 = inlined_call_operand.vmem [shape: bf16[512,16], index: 9, kind: input, shape index: {}]   ;;  %s7739_s10 = inlined_call_operand.vmem [shape: f32[1,16], index: 10, kind: input, shape index: {}]   ;;  %s7740_s11 = inlined_call_operand.vmem [shape: bf16[16,512], index: 11, kind: input, shape index: {}]   ;;  %s7741_s12 = inlined_call_operand.vmem [shape: bf16[8,512], index: 12, kind: input, shape index: {}]   ;;  %s7742_s13 = inlined_call_operand.vmem [shape: bf16[16,512], index: 13, kind: input, shape index: {}]   ;;  %s7743_s14 = inlined_call_operand.vmem [shape: f32[1,512], index: 14, kind: input, shape index: {}]   ;;  %s7744_s15 = inlined_call_operand.vmem [shape: bf16[512,512], index: 15, kind: input, shape index: {}]   ;;  %s7745_s16 = inlined_call_operand.vmem [shape: f32[1,512], index: 16, kind: input, shape index: {}]   ;;  %s7746_s17 = inlined_call_operand.vmem [shape: bf16[512,128], index: 17, kind: input, shape index: {}]   ;;  %s7747_s18 = inlined_call_operand.vmem [shape: f32[1,128], index: 18, kind: input, shape index: {}]   ;;  %s7748_s19 = inlined_call_operand.hbm [shape: f32[16,128], index: 19, kind: output, shape index: {}]  }
   0x1   :  { %7758 = sst [smem:[#allocation12_spill]] %s7729_s0 }
   0x2   :  { %7759 = sst [smem:[#allocation13_spill]] %s7730_s1 }
   0x3   :  { %7760 = sst [smem:[#allocation14_spill]] %s7731_s2 }
   0x4   :  { %7761 = sst [smem:[#allocation15_spill]] %s7732_s3 }
   0x5   :  { %7762 = sst [smem:[#allocation16_spill]] %s7734_s5 }
   0x6   :  { %7763 = sst [smem:[#allocation17_spill]] %s7747_s18 }
   0x7   :  { %7764 = sst [smem:[#allocation18_spill]] %s7748_s19 }
   0x8   :  { %24 = vsyncpa [#allocation3], 0 }
   0x9   :  { %26 = vsyncpa [#allocation3 + $0x1], 0  ;;  %s6162_s0 = smov 0   ;;  %s6164_s30 = smov 0  }
   0xa   :  { %s6166_s20 = smov 0   ;;  %s6168_s21 = smov 0  }
   0xb LB: > { %7765 = sst [smem:[#allocation5_spill]] %s6045_s0  ;;  %s6183_s1 = sadd.s32 4294967295, %s6057_s21   ;;  %s6057_s21 = sphi %s6168_s21, %s7785_s21   ;;  %s6053_s20 = sphi %s6166_s20, %s7787_s20   ;;  %s6049_s30 = sphi %s6164_s30, %s7789_s30   ;;  %s6045_s0 = sphi %s6162_s0, %s7788_s0  }
   0xc   : > { %7766 = sst [smem:[#allocation6_spill]] %s6053_s20  ;;  %s5012_s22 = sadd.s32 4294967294, %s6057_s21  }
   0xd   : > { %7767 = sst [smem:[#allocation7_spill]] %s6057_s21  ;;  %s6187_s2 = sadd.s32 1, %s6057_s21  }
   0xe   : > { %7768 = sst [smem:[#allocation8_spill]] %s6187_s2  ;;  %s458_s23 = sadd.s32 1, %s6053_s20 }
   0xf   : > { %s455_s24 = ssub.s32 %s6057_s21, %s6187_s2  ;;  %p468_p0 = scmp.ne.s32.totalorder %s6053_s20, %s6049_s30 }
  0x10   : > { %p456_p1 = scmp.eq.s32.totalorder %s455_s24, 0  ;;  %p469_p2 = scmp.eq.s32.totalorder %s6183_s1, 1 }
  0x11   : > { %p474_p3 = scmp.ne.s32.totalorder %s6049_s30, %s6045_s0  ;;  %p475_p4 = scmp.eq.s32.totalorder %s5012_s22, 1 }
  0x12   : > { %s6198_s25 = scalar_select %p456_p1, %s6053_s20, %s458_s23  }
  0x13   : > { %p6200_p5 = por %p469_p2, %p468_p0  ;;  %p6204_p6 = por %p475_p4, %p474_p3 }
  0x14   : > { %7769 = sst [smem:[#allocation9_spill]] %s6198_s25  ;;  %p5015_p7 = scmp.ge.s32.totalorder %s6057_s21, 1 }
  0x15   : > { %s7770_s3 = scalar_select %p6200_p5, 1, 0 }
  0x16   : > { %s7772_s26 = scalar_select %p6204_p6, 1, 0 }
  0x17   : > { %7771 = sst [smem:[#allocation10_spill]] %s7770_s3  ;;  %p570_p8 = scmp.lt.s32.totalorder %s6057_s21, 3 }
  0x18   : > { %7773 = sst [smem:[#allocation11_spill]] %s7772_s26 }
  0x19   : > { %p571_p9 = pnand %p5015_p7, %p570_p8 }
  0x1a   : > { %s7774_s5 = sld [smem:[#allocation16_spill]] (!%p571_p9)  ;;  %s639_s29 = smul.u32 (!%p571_p9), 3, %s6183_s1 }
  0x1b   : > { %574 = sbr.rel (%p571_p9) target bundleno = 1533 (0x5fd), region = 96  ;;  %s7776_s21 = sld [smem:[#allocation13_spill]] (!%p571_p9) }
  0x1c   : > { %p640_p10 = scmp.lt.s32.totalorder (!%p571_p9), %s639_s29, 5  ;;  %p651_p11 = scmp.lt.s32.totalorder (!%p571_p9), %s6183_s1, 1 }
  0x1d   : > { %s7777_s28 = sld [smem:[#allocation15_spill]] (!%p571_p9) }
  0x1e   : > { %s7778_s18 = sld [smem:[#allocation14_spill]] (!%p571_p9) }
  0x1f   : > { %s7779_s2 = sld [smem:[#allocation17_spill]] (!%p571_p9) }
  0x20   : > { %v5517_v0 = vld [vmem:[%s7774_s5 + $0x4] ss:$16 sps:$4 sm:$0xff]   ;;  %v5519_v1 = vld [vmem:[%s7774_s5] ss:$16 sps:$4 sm:$0xff]   ;;  %v6059_v2 = vmov 0   ;;  %s7791_s29 = smov (!%p640_p10, %s639_s29), 5 }
  0x21   : > { %741 = vmatprep.mubr.bf16.mxu0 %v6059_v2  ;;  %792 = vmatprep.mubr.bf16.mxu1 %v6059_v2  ;;  %v5520_v3 = vld [vmem:[%s7774_s5 + $0xc] ss:$16 sps:$4 sm:$0xff]   ;;  %v5522_v4 = vld [vmem:[%s7774_s5 + $0x8] ss:$16 sps:$4 sm:$0xff]   ;;  %v5525_v5 = vld [vmem:[%s7733_s4 + $0x4] ss:$16 sps:$4 sm:$0xff]  }
  0x22   : > { %723 = vmatprep.subr.bf16.mxu0 %v5517_v0  ;;  %774 = vmatprep.subr.bf16.mxu1 %v5520_v3  ;;  %v5530_v6 = vld [vmem:[%s7733_s4 + $0xc] ss:$16 sps:$4 sm:$0xff]   ;;  %s5017_s25 = sshll.u32 %s7791_s29, 2  ;;  %v5523_v7 = vld [vmem:[%s7733_s4] ss:$16 sps:$4 sm:$0xff]   ;;  %s7775_s5 = sld [smem:[#allocation12_spill]] }
  0x23   : > { %724 = vmatpush1.bf16.msra.mxu0 %v5519_v1  ;;  %775 = vmatpush1.bf16.msra.mxu1 %v5522_v4  ;;  %s649_s19 = scalar_lea.vmem %s7776_s21, %s5017_s25  ;;  %vm702_vm0 = vcmask 130048   ;;  %v5528_v8 = vld [vmem:[%s7733_s4 + $0x8] ss:$16 sps:$4 sm:$0xff]   ;;  %v5535_v10 = vld [vmem:[%s7736_s7 + $0xe4] ss:$16 sps:$4 sm:$0xff]   ;;  %vm3249_vm1 = vcmask 1043456  }
  0x24   : > { %859 = vmatprep.subr.bf16.mxu0 %v5525_v5  ;;  %910 = vmatprep.subr.bf16.mxu1 %v5530_v6  ;;  %v5526_v9 = vld [vmem:[%s649_s19] sm:$0xff]   ;;  %v5531_v12 = vld [vmem:[%s649_s19 + $0x8] ss:$0 sps:$4 sm:$0xff]   ;;  %vm2519_vm2 = vcmask 1042432   ;;  %vm2912_vm3 = vcmask 1041409   ;;  %vm2914_vm4 = vcmask 1042434  }
  0x25   : > { %v5538_v11 = vld [vmem:[%s7736_s7 + $0x2e4] ss:$16 sps:$4 sm:$0xff]   ;;  %v5533_v14 = vld [vmem:[%s7736_s7 + $0xe0] ss:$16 sps:$4 sm:$0xff]   ;;  %vm2916_vm5 = vcmask 1043459   ;;  %vm2918_vm6 = vcmask 1044484  }
  0x26   : > { %5027 = vmatmul.mubr.msk.bf16.vlgmr.msra.gmra.mxu0 %vm702_vm0, %v5526_v9  ;;  %5029 = vmatmul.mubr.msk.bf16.vlgmr.msra.gmra.mxu1 %vm702_vm0, %v5526_v9  ;;  %v5536_v15 = vld [vmem:[%s7736_s7 + $0x2e0] ss:$16 sps:$4 sm:$0xff]   ;;  %v5541_v16 = vld [vmem:[%s7736_s7 + $0xc4] ss:$16 sps:$4 sm:$0xff]   ;;  %vm2920_vm7 = vcmask 1045509   ;;  %vm2922_vm8 = vcmask 1046534  }
  0x27   : > { %860 = vmatpush1.bf16.msra.mxu0 %v5523_v7  ;;  %911 = vmatpush1.bf16.msra.mxu1 %v5528_v8  ;;  %v5544_v17 = vld [vmem:[%s7736_s7 + $0x2c4] ss:$16 sps:$4 sm:$0xff]   ;;  %v5539_v18 = vld [vmem:[%s7736_s7 + $0xc0] ss:$16 sps:$4 sm:$0xff]   ;;  %vm2924_vm9 = vcmask 1047559   ;;  %vm3245_vm10 = vcmask 64512  }
  0x28   : > { %s6237_s0 = scalar_lea.vmem %s7775_s5, %s5017_s25  ;;  %751 = vmatprep.mubr.bf16.mxu0 %v6059_v2  ;;  %802 = vmatprep.mubr.bf16.mxu1 %v6059_v2  ;;  %v5542_v20 = vld [vmem:[%s7736_s7 + $0x2c0] ss:$16 sps:$4 sm:$0xff]   ;;  %v5547_v21 = vld [vmem:[%s7736_s7 + $0xa4] ss:$16 sps:$4 sm:$0xff]   ;;  %s7781_s5 = sld [smem:[#allocation18_spill]] }
  0x29   : > { %1791 = vmatprep.subr.bf16.mxu0 %v5535_v10  ;;  %1842 = vmatprep.subr.bf16.mxu1 %v5538_v11  ;;  %v5527_v13 = vld [vmem:[%s6237_s0] sm:$0xff]   ;;  %v5532_v19 = vld [vmem:[%s6237_s0 + $0x8] ss:$0 sps:$4 sm:$0xff]   ;;  %s7085_s25 = scalar_select %p651_p11, %s6183_s1, 1 }
  0x2a   : > { %v5550_v22 = vld [vmem:[%s7736_s7 + $0x2a4] ss:$16 sps:$4 sm:$0xff]   ;;  %v5545_v23 = vld [vmem:[%s7736_s7 + $0xa0] ss:$16 sps:$4 sm:$0xff]  }
  0x2b   : > { %v5548_v24 = vld [vmem:[%s7736_s7 + $0x2a0] ss:$16 sps:$4 sm:$0xff]   ;;  %v5553_v25 = vld [vmem:[%s7736_s7 + $0x84] ss:$16 sps:$4 sm:$0xff]   ;;  %s5019_s20 = sshll.u32 %s7085_s25, 2  ;;  %s636_s25 = sand.u32 1, %s6049_s30  }
  0x2c   : > { %v5556_v26 = vld [vmem:[%s7736_s7 + $0x284] ss:$16 sps:$4 sm:$0xff]   ;;  %v5551_v27 = vld [vmem:[%s7736_s7 + $0x80] ss:$16 sps:$4 sm:$0xff]   ;;  %s658_s29 = scalar_lea.vmem %s7777_s28, %s5019_s20  ;;  %s654_s21 = scalar_lea.vmem %s7778_s18, %s5019_s20 }
  0x2d   : > { %v5554_v28 = vld [vmem:[%s7736_s7 + $0x280] ss:$16 sps:$4 sm:$0xff]   ;;  %v5559_v29 = vld [vmem:[%s7736_s7 + $0x64] ss:$16 sps:$4 sm:$0xff]   ;;  %s5016_s24 = sshll.u32 %s636_s25, 3  ;;  %s5385_s28 = sshll.u32 %s6183_s1, 7 }
  0x2e   : > { %5028 = vmatmul.mubr.msk.bf16.gmra.mxu0 %vm702_vm0, %v5531_v12  ;;  %5030 = vmatmul.mubr.msk.bf16.gmra.mxu1 %vm702_vm0, %v5531_v12  ;;  %v5562_v30 = vld [vmem:[%s7736_s7 + $0x264] ss:$16 sps:$4 sm:$0xff]   ;;  %v5557_v31 = vld [vmem:[%s7736_s7 + $0x60] ss:$16 sps:$4 sm:$0xff]   ;;  %s7694_s18 = scalar_lea.hbm %s7781_s5, %s5385_s28  ;;  %s6061_s1 = smov [#allocation2]  }
  0x2f   : > { %877 = vmatprep.mubr.bf16.mxu0 %v6059_v2  ;;  %928 = vmatprep.mubr.bf16.mxu1 %v6059_v2  ;;  %v5560_v32 = vld [vmem:[%s7736_s7 + $0x260] ss:$16 sps:$4 sm:$0xff]   ;;  %v5565_v33 = vld [vmem:[%s7736_s7 + $0x44] ss:$16 sps:$4 sm:$0xff]   ;;  %s6001_s3 = sshll.u32 %s6061_s1, 4  ;;  %s6002_s3 = int_to_ptr.vmem [resolvable:$false] %s6001_s3 }
  0x30   : > { %v5568_v34 = vld [vmem:[%s7736_s7 + $0x244] ss:$16 sps:$4 sm:$0xff]   ;;  %v5563_v35 = vld [vmem:[%s7736_s7 + $0x40] ss:$16 sps:$4 sm:$0xff]  }
  0x31   : > { %v5566_v36 = vld [vmem:[%s7736_s7 + $0x240] ss:$16 sps:$4 sm:$0xff]   ;;  %v5571_v37 = vld [vmem:[%s7736_s7 + $0x24] ss:$16 sps:$4 sm:$0xff]  }
  0x32   : > { %v5574_v38 = vld [vmem:[%s7736_s7 + $0x224] ss:$16 sps:$4 sm:$0xff]   ;;  %v5569_v39 = vld [vmem:[%s7736_s7 + $0x20] ss:$16 sps:$4 sm:$0xff]  }
  0x33   : > { %v5572_v40 = vld [vmem:[%s7736_s7 + $0x220] ss:$16 sps:$4 sm:$0xff]   ;;  %v5577_v41 = vld [vmem:[%s7736_s7 + $0x4] ss:$16 sps:$4 sm:$0xff]  }
  0x34   : > { %v5580_v42 = vld [vmem:[%s7736_s7 + $0x204] ss:$16 sps:$4 sm:$0xff]   ;;  %v5575_v43 = vld [vmem:[%s7736_s7] ss:$16 sps:$4 sm:$0xff]  }
  0x35   : > { %v5578_v44 = vld [vmem:[%s7736_s7 + $0x200] ss:$16 sps:$4 sm:$0xff]   ;;  %v5583_v45 = vld [vmem:[%s7736_s7 + $0x1e4] ss:$16 sps:$4 sm:$0xff]  }
  0x36   : > { %5037 = vmatmul.mubr.msk.bf16.vlgmr.msra.gmra.mxu0 %vm702_vm0, %v5527_v13  ;;  %5039 = vmatmul.mubr.msk.bf16.vlgmr.msra.gmra.mxu1 %vm702_vm0, %v5527_v13  ;;  %v5586_v46 = vld [vmem:[%s7736_s7 + $0x3e4] ss:$16 sps:$4 sm:$0xff]   ;;  %v5581_v47 = vld [vmem:[%s7736_s7 + $0x1e0] ss:$16 sps:$4 sm:$0xff]  }
  0x37   : > { %887 = vmatprep.mubr.bf16.mxu0 %v6059_v2  ;;  %938 = vmatprep.mubr.bf16.mxu1 %v6059_v2  ;;  %v5584_v48 = vld [vmem:[%s7736_s7 + $0x3e0] ss:$16 sps:$4 sm:$0xff]   ;;  %v5589_v49 = vld [vmem:[%s7736_s7 + $0x1c4] ss:$16 sps:$4 sm:$0xff]  }
  0x38   : > { %1792 = vmatpush1.bf16.msra.mxu0 %v5533_v14  ;;  %1843 = vmatpush1.bf16.msra.mxu1 %v5536_v15  ;;  %v5592_v50 = vld [vmem:[%s7736_s7 + $0x3c4] ss:$16 sps:$4 sm:$0xff]   ;;  %v5587_v51 = vld [vmem:[%s7736_s7 + $0x1c0] ss:$16 sps:$4 sm:$0xff]   ;;  %v5631_v14 = vld [vmem:[%s7736_s7 + $0xec] ss:$16 sps:$4 sm:$0xff]  }
  0x39   : > { %1793 = vmatprep.subr.bf16.mxu0 %v5541_v16  ;;  %1844 = vmatprep.subr.bf16.mxu1 %v5544_v17  ;;  %v5590_v52 = vld [vmem:[%s7736_s7 + $0x3c0] ss:$16 sps:$4 sm:$0xff]   ;;  %v5595_v53 = vld [vmem:[%s7736_s7 + $0x1a4] ss:$16 sps:$4 sm:$0xff]   ;;  %v5634_v15 = vld [vmem:[%s7736_s7 + $0x2ec] ss:$16 sps:$4 sm:$0xff]  }
  0x3a   : > { %v5598_v54 = vld [vmem:[%s7736_s7 + $0x3a4] ss:$16 sps:$4 sm:$0xff]   ;;  %v5593_v55 = vld [vmem:[%s7736_s7 + $0x1a0] ss:$16 sps:$4 sm:$0xff]  }
  0x3b   : > { %v5596_v56 = vld [vmem:[%s7736_s7 + $0x3a0] ss:$16 sps:$4 sm:$0xff]   ;;  %v5601_v57 = vld [vmem:[%s7736_s7 + $0x184] ss:$16 sps:$4 sm:$0xff]  }
  0x3c   : > { %1794 = vmatpush1.bf16.msra.mxu0 %v5539_v18  ;;  %1845 = vmatpush1.bf16.msra.mxu1 %v5542_v20  ;;  %v5604_v58 = vld [vmem:[%s7736_s7 + $0x384] ss:$16 sps:$4 sm:$0xff]   ;;  %v5599_v59 = vld [vmem:[%s7736_s7 + $0x180] ss:$16 sps:$4 sm:$0xff]  }
  0x3d   : > { %1795 = vmatprep.subr.bf16.mxu0 %v5547_v21  ;;  %1846 = vmatprep.subr.bf16.mxu1 %v5550_v22  ;;  %v5602_v60 = vld [vmem:[%s7736_s7 + $0x380] ss:$16 sps:$4 sm:$0xff]   ;;  %v5607_v61 = vld [vmem:[%s7736_s7 + $0x164] ss:$16 sps:$4 sm:$0xff]  }
  0x3e   : > { %5038 = vmatmul.mubr.msk.bf16.gmra.mxu0 %vm702_vm0, %v5532_v19  ;;  %5040 = vmatmul.mubr.msk.bf16.gmra.mxu1 %vm702_vm0, %v5532_v19  ;;  %v5610_v62 = vld [vmem:[%s7736_s7 + $0x364] ss:$16 sps:$4 sm:$0xff]   ;;  %v5605_v63 = vld [vmem:[%s7736_s7 + $0x160] ss:$16 sps:$4 sm:$0xff]  }
  0x3f   : > { %v5608_v0 = vld [vmem:[%s7736_s7 + $0x360] ss:$16 sps:$4 sm:$0xff]   ;;  %v5613_v1 = vld [vmem:[%s7736_s7 + $0x144] ss:$16 sps:$4 sm:$0xff]  }
  0x40   : > { %1796 = vmatpush1.bf16.msra.mxu0 %v5545_v23  ;;  %1847 = vmatpush1.bf16.msra.mxu1 %v5548_v24  ;;  %v5616_v3 = vld [vmem:[%s7736_s7 + $0x344] ss:$16 sps:$4 sm:$0xff]   ;;  %v5611_v4 = vld [vmem:[%s7736_s7 + $0x140] ss:$16 sps:$4 sm:$0xff]  }
  0x41   : > { %1797 = vmatprep.subr.bf16.mxu0 %v5553_v25  ;;  %1848 = vmatprep.subr.bf16.mxu1 %v5556_v26  ;;  %v5614_v5 = vld [vmem:[%s7736_s7 + $0x340] ss:$16 sps:$4 sm:$0xff]   ;;  %v5619_v6 = vld [vmem:[%s7736_s7 + $0x124] ss:$16 sps:$4 sm:$0xff]   ;;  %v949_v26 = vlaneseq }
  0x42   : > { %v5622_v7 = vld [vmem:[%s7736_s7 + $0x324] ss:$16 sps:$4 sm:$0xff]   ;;  %v5617_v8 = vld [vmem:[%s7736_s7 + $0x120] ss:$16 sps:$4 sm:$0xff]  }
  0x43   : > { %v5620_v9 = vld [vmem:[%s7736_s7 + $0x320] ss:$16 sps:$4 sm:$0xff]   ;;  %v5625_v10 = vld [vmem:[%s7736_s7 + $0x104] ss:$16 sps:$4 sm:$0xff]  }
  0x44   : > { %1798 = vmatpush1.bf16.msra.mxu0 %v5551_v27  ;;  %1849 = vmatpush1.bf16.msra.mxu1 %v5554_v28  ;;  %v5628_v11 = vld [vmem:[%s7736_s7 + $0x304] ss:$16 sps:$4 sm:$0xff]   ;;  %v5623_v12 = vld [vmem:[%s7736_s7 + $0x100] ss:$16 sps:$4 sm:$0xff]  }
  0x45   : > { %1799 = vmatprep.subr.bf16.mxu0 %v5559_v29  ;;  %1850 = vmatprep.subr.bf16.mxu1 %v5562_v30  ;;  %v5626_v13 = vld [vmem:[%s7736_s7 + $0x300] ss:$16 sps:$4 sm:$0xff]  }
  0x48   : > { %1800 = vmatpush1.bf16.msra.mxu0 %v5557_v31  ;;  %1851 = vmatpush1.bf16.msra.mxu1 %v5560_v32  ;;  %v6459_v31 = vshrl.u32 %v949_v26, 7 }
  0x49   : > { %1801 = vmatprep.subr.bf16.mxu0 %v5565_v33  ;;  %1852 = vmatprep.subr.bf16.mxu1 %v5568_v34 }
  0x4a   : > { %v6462_v34 = vsub.s32 1, %v6459_v31 }
  0x4c   : > { %1802 = vmatpush1.bf16.msra.mxu0 %v5563_v35  ;;  %1853 = vmatpush1.bf16.msra.mxu1 %v5566_v36  ;;  %v6465_v35 = vsub.s32 3, %v6459_v31 }
  0x4d   : > { %1803 = vmatprep.subr.bf16.mxu0 %v5571_v37  ;;  %1854 = vmatprep.subr.bf16.mxu1 %v5574_v38  ;;  %v6468_v37 = vsub.s32 0, %v6459_v31 }
  0x50   : > { %1804 = vmatpush1.bf16.msra.mxu0 %v5569_v39  ;;  %1855 = vmatpush1.bf16.msra.mxu1 %v5572_v40  ;;  %v6471_v39 = vsub.s32 2, %v6459_v31  ;;  %v947_v40 = vld [vmem:[%s7735_s6] sm:$0xf] }
  0x51   : > { %1805 = vmatprep.subr.bf16.mxu0 %v5577_v41  ;;  %1856 = vmatprep.subr.bf16.mxu1 %v5580_v42 }
  0x54   : > { %1806 = vmatpush1.bf16.msra.mxu0 %v5575_v43  ;;  %1857 = vmatpush1.bf16.msra.mxu1 %v5578_v44  ;;  %v956_v44 = vrot.slane %v947_v40, %v6462_v34 }
  0x55   : > { %1807 = vmatprep.subr.bf16.mxu0 %v5583_v45  ;;  %1858 = vmatprep.subr.bf16.mxu1 %v5586_v46  ;;  %v964_v46 = vrot.slane %v947_v40, %v6465_v35 }
  0x58   : > { %1808 = vmatpush2.bf16.msra.mxu0 %v5581_v47  ;;  %1859 = vmatpush2.bf16.msra.mxu1 %v5584_v48  ;;  %v952_v48 = vrot.slane %v947_v40, %v6468_v37 }
  0x59   : > { %1809 = vmatprep.subr.bf16.mxu0 %v5589_v49  ;;  %1860 = vmatprep.subr.bf16.mxu1 %v5592_v50  ;;  %v960_v50 = vrot.slane %v947_v40, %v6471_v39 }
  0x5c   : > { %1810 = vmatpush2.bf16.msra.mxu0 %v5587_v51  ;;  %1861 = vmatpush2.bf16.msra.mxu1 %v5590_v52 }
  0x5d   : > { %1811 = vmatprep.subr.bf16.mxu0 %v5595_v53  ;;  %1862 = vmatprep.subr.bf16.mxu1 %v5598_v54 }
  0x60   : > { %1812 = vmatpush2.bf16.msra.mxu0 %v5593_v55  ;;  %1863 = vmatpush2.bf16.msra.mxu1 %v5596_v56 }
  0x61   : > { %1813 = vmatprep.subr.bf16.mxu0 %v5601_v57  ;;  %1864 = vmatprep.subr.bf16.mxu1 %v5604_v58 }
  0x64   : > { %1814 = vmatpush2.bf16.msra.mxu0 %v5599_v59  ;;  %1865 = vmatpush2.bf16.msra.mxu1 %v5602_v60 }
  0x65   : > { %1815 = vmatprep.subr.bf16.mxu0 %v5607_v61  ;;  %1866 = vmatprep.subr.bf16.mxu1 %v5610_v62 }
  0x68   : > { %1816 = vmatpush2.bf16.msra.mxu0 %v5605_v63  ;;  %1867 = vmatpush2.bf16.msra.mxu1 %v5608_v0 }
  0x69   : > { %1817 = vmatprep.subr.bf16.mxu0 %v5613_v1  ;;  %1868 = vmatprep.subr.bf16.mxu1 %v5616_v3 }
  0x6c   : > { %1818 = vmatpush2.bf16.msra.mxu0 %v5611_v4  ;;  %1869 = vmatpush2.bf16.msra.mxu1 %v5614_v5 }
  0x6d   : > { %1819 = vmatprep.subr.bf16.mxu0 %v5619_v6  ;;  %1870 = vmatprep.subr.bf16.mxu1 %v5622_v7 }
  0x70   : > { %1820 = vmatpush2.bf16.msra.mxu0 %v5617_v8  ;;  %1871 = vmatpush2.bf16.msra.mxu1 %v5620_v9 }
  0x71   : > { %1821 = vmatprep.subr.bf16.mxu0 %v5625_v10  ;;  %1872 = vmatprep.subr.bf16.mxu1 %v5628_v11 }
  0x74   : > { %1822 = vmatpush2.bf16.msra.mxu0 %v5623_v12  ;;  %1873 = vmatpush2.bf16.msra.mxu1 %v5626_v13 }
  0x75   : > { %1893 = vmatprep.subr.bf16.mxu0 %v5631_v14  ;;  %1944 = vmatprep.subr.bf16.mxu1 %v5634_v15 }
  0xe6   : > { %v743_v16 = vpop.f32.mrf.mxu0  ;;  %v794_v17 = vpop.f32.mrf.mxu1 }
  0xe8   : > { %v745_v18 = vpop.f32.mrf.mxu0  ;;  %v796_v19 = vpop.f32.mrf.mxu1 }
  0xea   : > { %v747_v20 = vpop.f32.mrf.mxu0  ;;  %v798_v21 = vpop.f32.mrf.mxu1 }
  0xec   : > { %v749_v22 = vpop.f32.mrf.mxu0  ;;  %v800_v23 = vpop.f32.mrf.mxu1 }
  0xee   : > { %v753_v24 = vpop.f32.mrf.mxu0  ;;  %v804_v25 = vpop.f32.mrf.mxu1 }
  0xf0   : > { %v755_v27 = vpop.f32.mrf.mxu0  ;;  %v806_v28 = vpop.f32.mrf.mxu1 }
  0xf2   : > { %v757_v29 = vpop.f32.mrf.mxu0  ;;  %v808_v30 = vpop.f32.mrf.mxu1 }
  0xf4   : > { %v758_v32 = vpop.f32.mrf.mxu0  ;;  %v809_v33 = vpop.f32.mrf.mxu1 }
  0xf5   : > { %v5637_v33 = vld [vmem:[%s7736_s7 + $0xcc] ss:$16 sps:$4 sm:$0xff]  }
  0xf6   : > { %v879_v36 = vpop.f32.mrf.mxu0  ;;  %v930_v38 = vpop.f32.mrf.mxu1 }
  0xf7   : > { %v880_v47 = vadd.f32 %v879_v36, %v743_v16  ;;  %v931_v49 = vadd.f32 %v930_v38, %v794_v17  ;;  %v5640_v36 = vld [vmem:[%s7736_s7 + $0x2cc] ss:$16 sps:$4 sm:$0xff]  }
  0xf8   : > { %v881_v41 = vpop.f32.mrf.mxu0  ;;  %v932_v42 = vpop.f32.mrf.mxu1 }
  0xf9   : > { %v882_v43 = vadd.f32 %v881_v41, %v745_v18  ;;  %v933_v45 = vadd.f32 %v932_v42, %v796_v19  ;;  %v969_v61 = vadd.f32 %v952_v48, %v880_v47  ;;  %v971_v62 = vadd.f32 %v960_v50, %v931_v49  ;;  %v5643_v49 = vld [vmem:[%s7736_s7 + $0xac] ss:$16 sps:$4 sm:$0xff]  }
  0xfa   : > { %v883_v51 = vpop.f32.mrf.mxu0  ;;  %v934_v52 = vpop.f32.mrf.mxu1 }
  0xfb   : > { %v884_v53 = vadd.f32 %v883_v51, %v747_v20  ;;  %v935_v54 = vadd.f32 %v934_v52, %v798_v21  ;;  %v970_v57 = vadd.f32 %v956_v44, %v882_v43  ;;  %v972_v58 = vadd.f32 %v964_v46, %v933_v45  ;;  %v5635_v43 = vld [vmem:[%s7736_s7 + $0xc8] ss:$16 sps:$4 sm:$0xff]  }
  0xfc   : > { %v885_v55 = vpop.f32.mrf.mxu0  ;;  %v936_v56 = vpop.f32.mrf.mxu1  ;;  %v981_v16 = vmax.f32 %v969_v61, 0.0  ;;  %v983_v17 = vmax.f32 %v971_v62, 0.0  ;;  %v5641_v51 = vld [vmem:[%s7736_s7 + $0xa8] ss:$16 sps:$4 sm:$0xff]  }
  0xfd   : > { %v886_v59 = vadd.f32 %v885_v55, %v749_v22  ;;  %v937_v60 = vadd.f32 %v936_v56, %v800_v23  ;;  %v973_v63 = vadd.f32 %v952_v48, %v884_v53  ;;  %v975_v0 = vadd.f32 %v960_v50, %v935_v54  ;;  %v5644_v52 = vld [vmem:[%s7736_s7 + $0x2a8] ss:$16 sps:$4 sm:$0xff]   ;;  %v5649_v55 = vld [vmem:[%s7736_s7 + $0x8c] ss:$16 sps:$4 sm:$0xff]  }
  0xfe   : > { %v889_v1 = vpop.f32.mrf.mxu0  ;;  %v940_v3 = vpop.f32.mrf.mxu1  ;;  %v982_v12 = vmax.f32 %v970_v57, 0.0  ;;  %v984_v13 = vmax.f32 %v972_v58, 0.0  ;;  %v5652_v56 = vld [vmem:[%s7736_s7 + $0x28c] ss:$16 sps:$4 sm:$0xff]   ;;  %v5647_v57 = vld [vmem:[%s7736_s7 + $0x88] ss:$16 sps:$4 sm:$0xff]  }
  0xff   : > { %v974_v4 = vadd.f32 %v956_v44, %v886_v59  ;;  %v976_v5 = vadd.f32 %v964_v46, %v937_v60  ;;  %v890_v6 = vadd.f32 %v889_v1, %v753_v24  ;;  %v941_v7 = vadd.f32 %v940_v3, %v804_v25  ;;  %v5629_v24 = vld [vmem:[%s7736_s7 + $0xe8] ss:$16 sps:$4 sm:$0xff]   ;;  %v5655_v59 = vld [vmem:[%s7736_s7 + $0x6c] ss:$16 sps:$4 sm:$0xff]  }
 0x100   : > { %v985_v8 = vmax.f32 %v973_v63, 0.0  ;;  %v987_v9 = vmax.f32 %v975_v0, 0.0  ;;  %v891_v10 = vpop.f32.mrf.mxu0  ;;  %v942_v11 = vpop.f32.mrf.mxu1  ;;  %v5632_v25 = vld [vmem:[%s7736_s7 + $0x2e8] ss:$16 sps:$4 sm:$0xff]   ;;  %v5658_v60 = vld [vmem:[%s7736_s7 + $0x26c] ss:$16 sps:$4 sm:$0xff]  }
 0x101   : > { %v986_v14 = vmax.f32 %v974_v4, 0.0  ;;  %v988_v15 = vmax.f32 %v976_v5, 0.0  ;;  %v892_v18 = vadd.f32 %v891_v10, %v755_v27  ;;  %v943_v19 = vadd.f32 %v942_v11, %v806_v28  ;;  %v5650_v58 = vld [vmem:[%s7736_s7 + $0x288] ss:$16 sps:$4 sm:$0xff]   ;;  %v5661_v63 = vld [vmem:[%s7736_s7 + $0x4c] ss:$16 sps:$4 sm:$0xff]  }
 0x102   : > { %v893_v20 = vpop.f32.mrf.mxu0  ;;  %v944_v21 = vpop.f32.mrf.mxu1  ;;  %v977_v22 = vadd.f32 %v952_v48, %v890_v6  ;;  %v979_v23 = vadd.f32 %v960_v50, %v941_v7  ;;  %v6486_v30 = vpack.c.bf16 %v985_v8, %v981_v16  ;;  %v6488_v32 = vpack.c.bf16 %v987_v9, %v983_v17  ;;  %v5646_v50 = vld [vmem:[%s7736_s7 + $0x2ac] ss:$16 sps:$4 sm:$0xff]   ;;  %v5653_v61 = vld [vmem:[%s7736_s7 + $0x68] ss:$16 sps:$4 sm:$0xff]  }
 0x103   : > { %v994_v26 = vpack.c.bf16 %v986_v14, %v982_v12  ;;  %v996_v29 = vpack.c.bf16 %v988_v15, %v984_v13  ;;  %v978_v27 = vadd.f32 %v956_v44, %v892_v18  ;;  %v980_v28 = vadd.f32 %v964_v46, %v943_v19  ;;  %v5638_v44 = vld [vmem:[%s7736_s7 + $0x2c8] ss:$16 sps:$4 sm:$0xff]   ;;  %v5664_v0 = vld [vmem:[%s7736_s7 + $0x24c] ss:$16 sps:$4 sm:$0xff]  }
 0x104   : > { %v894_v38 = vpop.f32.mrf.mxu0  ;;  %v945_v40 = vpop.f32.mrf.mxu1  ;;  %v989_v45 = vmax.f32 %v977_v22, 0.0  ;;  %v991_v46 = vmax.f32 %v979_v23, 0.0  ;;  %v5656_v62 = vld [vmem:[%s7736_s7 + $0x268] ss:$16 sps:$4 sm:$0xff]   ;;  %v5667_v4 = vld [vmem:[%s7736_s7 + $0x2c] ss:$16 sps:$4 sm:$0xff]  }
 0x105   : > { %1823 = vmatprep.mubr.bf16.mxu0 %v994_v26  ;;  %1874 = vmatprep.mubr.bf16.mxu1 %v996_v29  ;;  %v990_v41 = vmax.f32 %v978_v27, 0.0  ;;  %v992_v42 = vmax.f32 %v980_v28, 0.0  ;;  %v5659_v1 = vld [vmem:[%s7736_s7 + $0x48] ss:$16 sps:$4 sm:$0xff]   ;;  %v5670_v5 = vld [vmem:[%s7736_s7 + $0x22c] ss:$16 sps:$4 sm:$0xff]  }
 0x106   : > { %1824 = vmatmul.mubr.bf16.vlgmr.msra.gmra.mxu0 %v6486_v30  ;;  %1875 = vmatmul.mubr.bf16.vlgmr.msra.gmra.mxu1 %v6488_v32  ;;  %v6522_v53 = vpack.c.bf16 %v989_v45, %v989_v45  ;;  %v6524_v54 = vpack.c.bf16 %v991_v46, %v991_v46  ;;  %v5662_v3 = vld [vmem:[%s7736_s7 + $0x248] ss:$16 sps:$4 sm:$0xff]   ;;  %v5673_v8 = vld [vmem:[%s7736_s7 + $0xc] ss:$16 sps:$4 sm:$0xff]  }
 0x107   : > { %1894 = vmatpush1.bf16.msra.mxu0 %v5629_v24  ;;  %1945 = vmatpush1.bf16.msra.mxu1 %v5632_v25  ;;  %v6504_v47 = vpack.c.bf16 %v990_v41, %v990_v41  ;;  %v6506_v48 = vpack.c.bf16 %v992_v42, %v992_v42  ;;  %v5665_v6 = vld [vmem:[%s7736_s7 + $0x28] ss:$16 sps:$4 sm:$0xff]   ;;  %v5676_v9 = vld [vmem:[%s7736_s7 + $0x20c] ss:$16 sps:$4 sm:$0xff]  }
 0x108   : > { %1895 = vmatprep.subr.bf16.mxu0 %v5637_v33  ;;  %1946 = vmatprep.subr.bf16.mxu1 %v5640_v36  ;;  %v5668_v7 = vld [vmem:[%s7736_s7 + $0x228] ss:$16 sps:$4 sm:$0xff]   ;;  %v5679_v12 = vld [vmem:[%s7736_s7 + $0x1ec] ss:$16 sps:$4 sm:$0xff]  }
 0x109   : > { %1833 = vmatprep.mubr.bf16.mxu0 %v6504_v47  ;;  %1884 = vmatprep.mubr.bf16.mxu1 %v6506_v48  ;;  %v5671_v10 = vld [vmem:[%s7736_s7 + $0x8] ss:$16 sps:$4 sm:$0xff]   ;;  %v5682_v13 = vld [vmem:[%s7736_s7 + $0x3ec] ss:$16 sps:$4 sm:$0xff]  }
 0x10a   : > { %v5674_v11 = vld [vmem:[%s7736_s7 + $0x208] ss:$16 sps:$4 sm:$0xff]   ;;  %v5685_v16 = vld [vmem:[%s7736_s7 + $0x1cc] ss:$16 sps:$4 sm:$0xff]  }
 0x10b   : > { %1896 = vmatpush1.bf16.msra.mxu0 %v5635_v43  ;;  %1947 = vmatpush1.bf16.msra.mxu1 %v5638_v44  ;;  %v5677_v14 = vld [vmem:[%s7736_s7 + $0x1e8] ss:$16 sps:$4 sm:$0xff]   ;;  %v5688_v17 = vld [vmem:[%s7736_s7 + $0x3cc] ss:$16 sps:$4 sm:$0xff]  }
 0x10c   : > { %1897 = vmatprep.subr.bf16.mxu0 %v5643_v49  ;;  %1948 = vmatprep.subr.bf16.mxu1 %v5646_v50  ;;  %v5680_v15 = vld [vmem:[%s7736_s7 + $0x3e8] ss:$16 sps:$4 sm:$0xff]   ;;  %v5691_v20 = vld [vmem:[%s7736_s7 + $0x1ac] ss:$16 sps:$4 sm:$0xff]  }
 0x10d   : > { %v5683_v18 = vld [vmem:[%s7736_s7 + $0x1c8] ss:$16 sps:$4 sm:$0xff]   ;;  %v5694_v21 = vld [vmem:[%s7736_s7 + $0x3ac] ss:$16 sps:$4 sm:$0xff]  }
 0x10e   : > { %1834 = vmatmul.mubr.bf16.gmra.mxu0 %v6522_v53  ;;  %1885 = vmatmul.mubr.bf16.gmra.mxu1 %v6524_v54  ;;  %v5686_v19 = vld [vmem:[%s7736_s7 + $0x3c8] ss:$16 sps:$4 sm:$0xff]   ;;  %v5703_v27 = vld [vmem:[%s7736_s7 + $0x16c] ss:$16 sps:$4 sm:$0xff]  }
 0x10f   : > { %1898 = vmatpush1.bf16.msra.mxu0 %v5641_v51  ;;  %1949 = vmatpush1.bf16.msra.mxu1 %v5644_v52  ;;  %v5689_v22 = vld [vmem:[%s7736_s7 + $0x1a8] ss:$16 sps:$4 sm:$0xff]   ;;  %v5706_v28 = vld [vmem:[%s7736_s7 + $0x36c] ss:$16 sps:$4 sm:$0xff]  }
 0x110   : > { %1925 = vmatprep.mubr.bf16.mxu0 %v994_v26  ;;  %1976 = vmatprep.mubr.bf16.mxu1 %v996_v29  ;;  %v5692_v23 = vld [vmem:[%s7736_s7 + $0x3a8] ss:$16 sps:$4 sm:$0xff]   ;;  %v5697_v26 = vld [vmem:[%s7736_s7 + $0x18c] ss:$16 sps:$4 sm:$0xff]  }
 0x111   : > { %1899 = vmatprep.subr.bf16.mxu0 %v5649_v55  ;;  %1950 = vmatprep.subr.bf16.mxu1 %v5652_v56  ;;  %v5700_v29 = vld [vmem:[%s7736_s7 + $0x38c] ss:$16 sps:$4 sm:$0xff]   ;;  %v5695_v24 = vld [vmem:[%s7736_s7 + $0x188] ss:$16 sps:$4 sm:$0xff]   ;;  %v6693_v55 = vld [vmem:[%s7737_s8] sm:$0xf] }
 0x112   : > { %v5698_v25 = vld [vmem:[%s7736_s7 + $0x388] ss:$16 sps:$4 sm:$0xff]   ;;  %v5709_v38 = vld [vmem:[%s7736_s7 + $0x14c] ss:$16 sps:$4 sm:$0xff]   ;;  %v1134_v56 = vrot.slane %v6693_v55, %v6468_v37 }
 0x113   : > { %1900 = vmatpush1.bf16.msra.mxu0 %v5647_v57  ;;  %1951 = vmatpush1.bf16.msra.mxu1 %v5650_v58  ;;  %v5701_v33 = vld [vmem:[%s7736_s7 + $0x168] ss:$16 sps:$4 sm:$0xff]   ;;  %v5712_v40 = vld [vmem:[%s7736_s7 + $0x34c] ss:$16 sps:$4 sm:$0xff]   ;;  %v6060_v57 = vmov 1966171168  }
 0x114   : > { %1901 = vmatprep.subr.bf16.mxu0 %v5655_v59  ;;  %1952 = vmatprep.subr.bf16.mxu1 %v5658_v60  ;;  %v5704_v36 = vld [vmem:[%s7736_s7 + $0x368] ss:$16 sps:$4 sm:$0xff]   ;;  %v5715_v43 = vld [vmem:[%s7736_s7 + $0x12c] ss:$16 sps:$4 sm:$0xff]  }
 0x115   : > { %v5707_v41 = vld [vmem:[%s7736_s7 + $0x148] ss:$16 sps:$4 sm:$0xff]   ;;  %v5718_v44 = vld [vmem:[%s7736_s7 + $0x32c] ss:$16 sps:$4 sm:$0xff]  }
 0x116   : > { %v5710_v42 = vld [vmem:[%s7736_s7 + $0x348] ss:$16 sps:$4 sm:$0xff]   ;;  %v5721_v49 = vld [vmem:[%s7736_s7 + $0x10c] ss:$16 sps:$4 sm:$0xff]  }
 0x117   : > { %1902 = vmatpush1.bf16.msra.mxu0 %v5653_v61  ;;  %1953 = vmatpush1.bf16.msra.mxu1 %v5656_v62  ;;  %v5713_v45 = vld [vmem:[%s7736_s7 + $0x128] ss:$16 sps:$4 sm:$0xff]   ;;  %v5724_v50 = vld [vmem:[%s7736_s7 + $0x30c] ss:$16 sps:$4 sm:$0xff]  }
 0x118   : > { %1903 = vmatprep.subr.bf16.mxu0 %v5661_v63  ;;  %1954 = vmatprep.subr.bf16.mxu1 %v5664_v0  ;;  %v5716_v46 = vld [vmem:[%s7736_s7 + $0x328] ss:$16 sps:$4 sm:$0xff]  }
 0x119   : > { %v5719_v51 = vld [vmem:[%s7736_s7 + $0x108] ss:$16 sps:$4 sm:$0xff]  }
 0x11a   : > { %v5722_v52 = vld [vmem:[%s7736_s7 + $0x308] ss:$16 sps:$4 sm:$0xff]  }
 0x11b   : > { %1904 = vmatpush1.bf16.msra.mxu0 %v5659_v1  ;;  %1955 = vmatpush1.bf16.msra.mxu1 %v5662_v3 }
 0x11c   : > { %1905 = vmatprep.subr.bf16.mxu0 %v5667_v4  ;;  %1956 = vmatprep.subr.bf16.mxu1 %v5670_v5 }
 0x11f   : > { %1906 = vmatpush1.bf16.msra.mxu0 %v5665_v6  ;;  %1957 = vmatpush1.bf16.msra.mxu1 %v5668_v7  ;;  %v5725_v6 = vld [vmem:[%s7738_s9 + $0x78] sm:$0xff]  }
 0x120   : > { %1907 = vmatprep.subr.bf16.mxu0 %v5673_v8  ;;  %1958 = vmatprep.subr.bf16.mxu1 %v5676_v9 }
 0x123   : > { %1908 = vmatpush1.bf16.msra.mxu0 %v5671_v10  ;;  %1959 = vmatpush1.bf16.msra.mxu1 %v5674_v11  ;;  %v5726_v11 = vld [vmem:[%s7738_s9 + $0x38] sm:$0xff]  }
 0x124   : > { %1909 = vmatprep.subr.bf16.mxu0 %v5679_v12  ;;  %1960 = vmatprep.subr.bf16.mxu1 %v5682_v13 }
 0x127   : > { %1910 = vmatpush2.bf16.msra.mxu0 %v5677_v14  ;;  %1961 = vmatpush2.bf16.msra.mxu1 %v5680_v15 }
 0x128   : > { %1911 = vmatprep.subr.bf16.mxu0 %v5685_v16  ;;  %1962 = vmatprep.subr.bf16.mxu1 %v5688_v17  ;;  %v5728_v17 = vld [vmem:[%s7738_s9 + $0xb8] sm:$0xff]  }
 0x12b   : > { %1912 = vmatpush2.bf16.msra.mxu0 %v5683_v18  ;;  %1963 = vmatpush2.bf16.msra.mxu1 %v5686_v19 }
 0x12c   : > { %1913 = vmatprep.subr.bf16.mxu0 %v5691_v20  ;;  %1964 = vmatprep.subr.bf16.mxu1 %v5694_v21 }
 0x12f   : > { %1914 = vmatpush2.bf16.msra.mxu0 %v5689_v22  ;;  %1965 = vmatpush2.bf16.msra.mxu1 %v5692_v23  ;;  %v5729_v22 = vld [vmem:[%s7738_s9 + $0x70] sm:$0xff]  }
 0x130   : > { %1915 = vmatprep.subr.bf16.mxu0 %v5697_v26  ;;  %1966 = vmatprep.subr.bf16.mxu1 %v5700_v29 }
 0x133   : > { %1916 = vmatpush2.bf16.msra.mxu0 %v5695_v24  ;;  %1967 = vmatpush2.bf16.msra.mxu1 %v5698_v25  ;;  %v5730_v25 = vld [vmem:[%s7738_s9 + $0x30] sm:$0xff]  }
 0x134   : > { %1917 = vmatprep.subr.bf16.mxu0 %v5703_v27  ;;  %1968 = vmatprep.subr.bf16.mxu1 %v5706_v28 }
 0x137   : > { %1918 = vmatpush2.bf16.msra.mxu0 %v5701_v33  ;;  %1969 = vmatpush2.bf16.msra.mxu1 %v5704_v36  ;;  %v5731_v36 = vld [vmem:[%s7738_s9 + $0xf0] sm:$0xff]  }
 0x138   : > { %1919 = vmatprep.subr.bf16.mxu0 %v5709_v38  ;;  %1970 = vmatprep.subr.bf16.mxu1 %v5712_v40 }
 0x13b   : > { %1920 = vmatpush2.bf16.msra.mxu0 %v5707_v41  ;;  %1971 = vmatpush2.bf16.msra.mxu1 %v5710_v42  ;;  %v5732_v42 = vld [vmem:[%s7738_s9 + $0xb0] sm:$0xff]  }
 0x13c   : > { %1921 = vmatprep.subr.bf16.mxu0 %v5715_v43  ;;  %1972 = vmatprep.subr.bf16.mxu1 %v5718_v44 }
 0x13f   : > { %1922 = vmatpush2.bf16.msra.mxu0 %v5713_v45  ;;  %1973 = vmatpush2.bf16.msra.mxu1 %v5716_v46  ;;  %v5733_v45 = vld [vmem:[%s7738_s9 + $0x68] sm:$0xff]  }
 0x140   : > { %1923 = vmatprep.subr.bf16.mxu0 %v5721_v49  ;;  %1974 = vmatprep.subr.bf16.mxu1 %v5724_v50 }
 0x143   : > { %1924 = vmatpush2.bf16.msra.mxu0 %v5719_v51  ;;  %1975 = vmatpush2.bf16.msra.mxu1 %v5722_v52  ;;  %v5734_v52 = vld [vmem:[%s7738_s9 + $0x28] sm:$0xff]  }
 0x144   : > { %5388 = vmatprep.subr.bf16.mxu0 %v5725_v6  ;;  %v5749_v6 = vld [vmem:[%s7738_s9 + $0x48] sm:$0xff]  }
 0x146   : > { %1926 = vmatmul.mubr.bf16.vlgmr.msra.gmra.mxu0 %v6486_v30  ;;  %1977 = vmatmul.mubr.bf16.vlgmr.msra.gmra.mxu1 %v6488_v32  ;;  %v2024_v30 = vunpack.c.l.s4 %v6060_v57  ;;  %v1138_v32 = vrot.slane %v6693_v55, %v6462_v34 }
 0x147   : > { %1935 = vmatprep.mubr.bf16.mxu0 %v6504_v47  ;;  %1986 = vmatprep.mubr.bf16.mxu1 %v6506_v48 }
 0x148   : > { %v2025_v59 = vunpack.c.0.s8 %v2024_v30  ;;  %5389 = vmatpush3.bf16.msra.mxu0 %v5726_v11  ;;  %v5755_v11 = vld [vmem:[%s7738_s9 + $0xc0] sm:$0xff]  }
 0x149   : > { %5390 = vmatprep.subr.bf16.mxu0 %v5729_v22 }
 0x14a   : > { %v6700_v3 = vsub.s32 %v2025_v59, %v6459_v31  ;;  %v5727_v31 = vld [vmem:[%s7738_s9 + $0xf8] sm:$0xff]   ;;  %v5738_v59 = vld [vmem:[%s7738_s9 + $0x20] sm:$0xff]  }
 0x14b   : > { %5410 = vmatprep.subr.bf16.mxu1 %v5727_v31  ;;  %v1142_v31 = vrot.slane %v6693_v55, %v6471_v39 }
 0x14c   : > { %5411 = vmatpush3.bf16.msra.mxu1 %v5728_v17  ;;  %5391 = vmatpush3.bf16.msra.mxu0 %v5730_v25 }
 0x14d   : > { %5412 = vmatprep.subr.bf16.mxu1 %v5731_v36  ;;  %5392 = vmatprep.subr.bf16.mxu0 %v5733_v45 }
 0x14e   : > { %1936 = vmatmul.mubr.bf16.gmra.mxu0 %v6522_v53  ;;  %1987 = vmatmul.mubr.bf16.gmra.mxu1 %v6524_v54 }
 0x150   : > { %5413 = vmatpush3.bf16.msra.mxu1 %v5732_v42  ;;  %5393 = vmatpush3.bf16.msra.mxu0 %v5734_v52 }
 0x1c6   : > { %v1825_v47 = vpop.f32.mrf.mxu0  ;;  %v1876_v58 = vpop.f32.mrf.mxu1 }
 0x1c7   : > { %v1826_v48 = vadd.f32 %v1825_v47, %v1134_v56  ;;  %v5737_v47 = vld [vmem:[%s7738_s9 + $0x60] sm:$0xff]  }
 0x1c8   : > { %v1827_v53 = vpop.f32.mrf.mxu0  ;;  %v1878_v60 = vpop.f32.mrf.mxu1  ;;  %5394 = vmatprep.subr.bf16.mxu0 %v5737_v47 }
 0x1c9   : > { %v1877_v54 = vadd.f32 %v1876_v58, %v1826_v48  ;;  %v1828_v61 = vadd.f32 %v1827_v53, %v1138_v32  ;;  %v5739_v53 = vld [vmem:[%s7738_s9 + $0xe0] sm:$0xff]   ;;  %5395 = vmatpush3.bf16.msra.mxu0 %v5738_v59 }
 0x1ca   : > { %v1829_v62 = vpop.f32.mrf.mxu0  ;;  %v1880_v63 = vpop.f32.mrf.mxu1 }
 0x1cb   : > { %v1879_v0 = vadd.f32 %v1878_v60, %v1828_v61  ;;  %v1830_v1 = vadd.f32 %v1829_v62, %v1134_v56  ;;  %v1995_v7 = vmax.f32 %v1877_v54, 0.0  ;;  %v5740_v60 = vld [vmem:[%s7738_s9 + $0xa0] sm:$0xff]   ;;  %v5741_v54 = vld [vmem:[%s7738_s9 + $0x58] sm:$0xff]  }
 0x1cc   : > { %v1831_v4 = vpop.f32.mrf.mxu0  ;;  %v1882_v5 = vpop.f32.mrf.mxu1  ;;  %v5742_v61 = vld [vmem:[%s7738_s9 + $0x18] sm:$0xff]   ;;  %5396 = vmatprep.subr.bf16.mxu0 %v5741_v54 }
 0x1cd   : > { %v1996_v8 = vmax.f32 %v1879_v0, 0.0  ;;  %v1881_v9 = vadd.f32 %v1880_v63, %v1830_v1  ;;  %v1832_v10 = vadd.f32 %v1831_v4, %v1138_v32  ;;  %v5743_v62 = vld [vmem:[%s7738_s9 + $0xd8] sm:$0xff]   ;;  %5397 = vmatpush3.bf16.msra.mxu0 %v5742_v61  ;;  %v5745_v0 = vld [vmem:[%s7738_s9 + $0x50] sm:$0xff]  }
 0x1ce   : > { %v1835_v12 = vpop.f32.mrf.mxu0  ;;  %v1886_v13 = vpop.f32.mrf.mxu1  ;;  %v5744_v63 = vld [vmem:[%s7738_s9 + $0x98] sm:$0xff]   ;;  %v5746_v1 = vld [vmem:[%s7738_s9 + $0x10] sm:$0xff]   ;;  %5398 = vmatprep.subr.bf16.mxu0 %v5745_v0 }
 0x1cf   : > { %v2019_v14 = vcombine.low %v1995_v7, %v1996_v8  ;;  %v2020_v15 = vcombine.high %v1995_v7, %v1996_v8  ;;  %v1883_v16 = vadd.f32 %v1882_v5, %v1832_v10  ;;  %v1999_v18 = vmax.f32 %v1881_v9, 0.0  ;;  %v5747_v4 = vld [vmem:[%s7738_s9 + $0xd0] sm:$0xff]   ;;  %v5751_v7 = vld [vmem:[%s7738_s9 + $0xc8] sm:$0xff]   ;;  %v5753_v9 = vld [vmem:[%s7738_s9 + $0x40] sm:$0xff]  }
 0x1d0   : > { %v1836_v19 = vadd.f32 %v1835_v12, %v1134_v56  ;;  %v1837_v20 = vpop.f32.mrf.mxu0  ;;  %v1888_v21 = vpop.f32.mrf.mxu1  ;;  %v5735_v56 = vld [vmem:[%s7738_s9 + $0xe8] sm:$0xff]   ;;  %v5748_v5 = vld [vmem:[%s7738_s9 + $0x90] sm:$0xff]   ;;  %v5754_v12 = vld [vmem:[%s7738_s9] sm:$0xff]  }
 0x1d1   : > { %v6718_v23 = vrot.slane %v2019_v14, %v6700_v3  ;;  %v6721_v26 = vrot.slane %v2020_v15, %v6700_v3  ;;  %v2000_v29 = vmax.f32 %v1883_v16, 0.0  ;;  %v1838_v24 = vadd.f32 %v1837_v20, %v1138_v32  ;;  %v5736_v32 = vld [vmem:[%s7738_s9 + $0xa8] sm:$0xff]   ;;  %5414 = vmatprep.subr.bf16.mxu1 %v5735_v56  ;;  %5399 = vmatpush3.bf16.msra.mxu0 %v5746_v1  ;;  %v3233_v20 = vld [vmem:[%s7741_s12] sm:$0xff] }
 0x1d2   : > { %v1887_v27 = vadd.f32 %v1886_v13, %v1836_v19  ;;  %v1839_v28 = vpop.f32.mrf.mxu0  ;;  %v1890_v33 = vpop.f32.mrf.mxu1  ;;  %5415 = vmatpush3.bf16.msra.mxu1 %v5736_v32  ;;  %v5750_v8 = vld [vmem:[%s7738_s9 + $0x8] sm:$0xff]   ;;  %5400 = vmatprep.subr.bf16.mxu0 %v5749_v6  ;;  %v5756_v13 = vld [vmem:[%s7738_s9 + $0x80] sm:$0xff]   ;;  %v1146_v14 = vrot.slane %v6693_v55, %v6465_v35  ;;  %v5203_v25 = vcombine.low %v3233_v20, %v3233_v20 }
 0x1d3   : > { %v2087_v38 = vcombine.low %v1999_v18, %v2000_v29  ;;  %v2088_v40 = vcombine.high %v1999_v18, %v2000_v29  ;;  %v1889_v41 = vadd.f32 %v1888_v21, %v1838_v24  ;;  %5416 = vmatprep.subr.bf16.mxu1 %v5739_v53  ;;  %v5752_v10 = vld [vmem:[%s7738_s9 + $0x88] sm:$0xff]   ;;  %v5204_v24 = vcombine.high %v3233_v20, %v3233_v20 }
 0x1d4   : > { %v1840_v43 = vpop.f32.mrf.mxu0  ;;  %v1891_v44 = vpop.f32.mrf.mxu1  ;;  %v2003_v50 = vmax.f32 %v1887_v27, 0.0  ;;  %v3234_v21 = vld [vmem:[%s7741_s12 + $0x8] sm:$0xff] }
 0x1d5   : > { %v6736_v46 = vrot.slane %v2087_v38, %v6700_v3  ;;  %v6739_v49 = vrot.slane %v2088_v40, %v6700_v3  ;;  %v2004_v51 = vmax.f32 %v1889_v41, 0.0  ;;  %5401 = vmatpush3.bf16.msra.mxu0 %v5750_v8  ;;  %v5206_v28 = vcombine.high %v3234_v21, %v3234_v21 }
 0x1d6   : > { %5417 = vmatpush3.bf16.msra.mxu1 %v5740_v60  ;;  %5402 = vmatprep.subr.bf16.mxu0 %v5753_v9  ;;  %v5205_v33 = vcombine.low %v3234_v21, %v3234_v21  ;;  %v6828_v40 = vsel %vm3249_vm1, %v5203_v25, 0 }
 0x1d7   : > { %v2155_v57 = vcombine.low %v2003_v50, %v2004_v51  ;;  %v2156_v30 = vcombine.high %v2003_v50, %v2004_v51  ;;  %5418 = vmatprep.subr.bf16.mxu1 %v5743_v62 }
 0x1d8   : > { %v6832_v43 = vsel %vm3249_vm1, %v5205_v33, 0 }
 0x1d9   : > { %v6754_v58 = vrot.slane %v2155_v57, %v6700_v3  ;;  %v6757_v48 = vrot.slane %v2156_v30, %v6700_v3  ;;  %5403 = vmatpush3.bf16.msra.mxu0 %v5754_v12 }
 0x1da   : > { %5419 = vmatpush3.bf16.msra.mxu1 %v5744_v63  ;;  %5207 = vmatprep.subr.msk.bf16.mxu0 %vm3249_vm1, %v5204_v24 }
 0x1db   : > { %5420 = vmatprep.subr.bf16.mxu1 %v5747_v4 }
 0x1de   : > { %5421 = vmatpush3.bf16.msra.mxu1 %v5748_v5 }
 0x1df   : > { %5422 = vmatprep.subr.bf16.mxu1 %v5751_v7 }
 0x1e2   : > { %5423 = vmatpush3.bf16.msra.mxu1 %v5752_v10 }
 0x1e3   : > { %5424 = vmatprep.subr.bf16.mxu1 %v5755_v11 }
 0x1e6   : > { %5425 = vmatpush3.bf16.msra.mxu1 %v5756_v13 }
 0x1e7   : > { %5209 = vmatprep.subr.msk.bf16.mxu1 %vm3249_vm1, %v5206_v28 }
 0x206   : > { %v1927_v15 = vpop.f32.mrf.mxu0  ;;  %v1978_v16 = vpop.f32.mrf.mxu1 }
 0x207   : > { %v1928_v17 = vadd.f32 %v1927_v15, %v1142_v31 }
 0x208   : > { %v1929_v18 = vpop.f32.mrf.mxu0  ;;  %v1980_v19 = vpop.f32.mrf.mxu1 }
 0x209   : > { %v1979_v22 = vadd.f32 %v1978_v16, %v1928_v17  ;;  %v1930_v29 = vadd.f32 %v1929_v18, %v1146_v14 }
 0x20a   : > { %v1931_v27 = vpop.f32.mrf.mxu0  ;;  %v1982_v55 = vpop.f32.mrf.mxu1 }
 0x20b   : > { %v1981_v36 = vadd.f32 %v1980_v19, %v1930_v29  ;;  %v1932_v38 = vadd.f32 %v1931_v27, %v1142_v31  ;;  %v1997_v44 = vmax.f32 %v1979_v22, 0.0 }
 0x20c   : > { %v1933_v41 = vpop.f32.mrf.mxu0  ;;  %v1984_v42 = vpop.f32.mrf.mxu1 }
 0x20d   : > { %v1998_v45 = vmax.f32 %v1981_v36, 0.0  ;;  %v1934_v50 = vadd.f32 %v1933_v41, %v1146_v14  ;;  %v1983_v51 = vadd.f32 %v1982_v55, %v1932_v38 }
 0x20e   : > { %v1937_v52 = vpop.f32.mrf.mxu0  ;;  %v1988_v56 = vpop.f32.mrf.mxu1 }
 0x20f   : > { %v2021_v57 = vcombine.low %v1997_v44, %v1998_v45  ;;  %v2022_v30 = vcombine.high %v1997_v44, %v1998_v45  ;;  %v1985_v32 = vadd.f32 %v1984_v42, %v1934_v50  ;;  %v1938_v47 = vadd.f32 %v1937_v52, %v1142_v31 }
 0x210   : > { %v1939_v59 = vpop.f32.mrf.mxu0  ;;  %v1990_v53 = vpop.f32.mrf.mxu1  ;;  %v2001_v63 = vmax.f32 %v1983_v51, 0.0 }
 0x211   : > { %v2043_v60 = vrot.slane %v2021_v57, %v6700_v3  ;;  %v2050_v54 = vrot.slane %v2022_v30, %v6700_v3  ;;  %v2002_v61 = vmax.f32 %v1985_v32, 0.0  ;;  %v1940_v62 = vadd.f32 %v1939_v59, %v1146_v14 }
 0x212   : > { %v6836_v0 = vadd.f32 %v1988_v56, %v1938_v47  ;;  %v1941_v1 = vpop.f32.mrf.mxu0  ;;  %v1992_v4 = vpop.f32.mrf.mxu1 }
 0x213   : > { %v2051_v5 = vcombine.low %v6718_v23, %v2043_v60  ;;  %v2052_v6 = vcombine.high %v6718_v23, %v2043_v60  ;;  %v2053_v7 = vcombine.low %v6721_v26, %v2050_v54  ;;  %v2054_v8 = vcombine.high %v6721_v26, %v2050_v54 }
 0x214   : > { %v2089_v9 = vcombine.low %v2001_v63, %v2002_v61  ;;  %v2090_v10 = vcombine.high %v2001_v63, %v2002_v61  ;;  %v6842_v11 = vadd.f32 %v1990_v53, %v1940_v62  ;;  %v1942_v12 = vpop.f32.mrf.mxu0  ;;  %v1993_v13 = vpop.f32.mrf.mxu1  ;;  %v2005_v26 = vmax.f32 %v6836_v0, 0.0 }
 0x215   : > { %v2061_v31 = vrot.slane %v2051_v5, %v6700_v3  ;;  %v2068_v14 = vrot.slane %v2053_v7, %v6700_v3  ;;  %v2075_v15 = vrot.slane %v2052_v6, %v6700_v3  ;;  %v2082_v16 = vrot.slane %v2054_v8, %v6700_v3 }
 0x216   : > { %v2111_v23 = vrot.slane %v2089_v9, %v6700_v3  ;;  %v2118_v17 = vrot.slane %v2090_v10, %v6700_v3  ;;  %v2006_v18 = vmax.f32 %v6842_v11, 0.0 }
 0x217   : > { %v2083_v19 = vcombine.high %v2061_v31, %v2061_v31  ;;  %v2085_v20 = vcombine.high %v2075_v15, %v2075_v15  ;;  %v2223_v21 = vcombine.low %v2061_v31, %v2075_v15  ;;  %v2270_v22 = vrot.slane %v2082_v16, %v6700_v3 }
 0x218   : > { %v5169_v29 = vcombine.high %v2068_v14, %v2082_v16  ;;  %v2119_v24 = vcombine.low %v6736_v46, %v2111_v23  ;;  %v2120_v25 = vcombine.high %v6736_v46, %v2111_v23  ;;  %v2121_v27 = vcombine.low %v6739_v49, %v2118_v17 }
 0x219   : > { %v2230_v55 = vrot.slane %v2223_v21, %v6700_v3  ;;  %v2237_v28 = vrot.slane %v2083_v19, %v6700_v3  ;;  %v2256_v33 = vcombine.low %v2085_v20, %v2068_v14  ;;  %v2122_v36 = vcombine.high %v6739_v49, %v2118_v17 }
 0x21a   : > { %v2296_v38 = vrot.slane %v5169_v29, %v6700_v3  ;;  %v2129_v41 = vrot.slane %v2119_v24, %v6700_v3  ;;  %v6862_v42 = vrot.slane %v2121_v27, %v6700_v3  ;;  %v6865_v44 = vrot.slane %v2120_v25, %v6700_v3 }
 0x21b   : > { %v2238_v46 = vcombine.low %v2230_v55, %v2237_v28  ;;  %v2239_v45 = vcombine.high %v2230_v55, %v2237_v28  ;;  %v2263_v50 = vrot.slane %v2256_v33, %v6700_v3  ;;  %v6869_v51 = vrot.slane %v2122_v36, %v6700_v3 }
 0x21c   : > { %v2151_v52 = vcombine.high %v2129_v41, %v2129_v41  ;;  %v2152_v49 = vcombine.high %v6862_v42, %v6862_v42  ;;  %v2153_v56 = vcombine.high %v6865_v44, %v6865_v44  ;;  %v2303_v57 = vrot.slane %v2129_v41, %v6700_v3 }
 0x21d   : > { %v2246_v30 = vrot.slane %v2238_v46, %v6700_v3  ;;  %v2253_v32 = vrot.slane %v2239_v45, %v6700_v3  ;;  %v2271_v47 = vcombine.low %v2263_v50, %v2270_v22  ;;  %v2272_v59 = vcombine.high %v2263_v50, %v2270_v22 }
 0x21e   : > { %v2154_v53 = vcombine.high %v6869_v51, %v6869_v51  ;;  %v2304_v60 = vcombine.low %v2296_v38, %v2303_v57  ;;  %v2305_v54 = vcombine.high %v2296_v38, %v2303_v57  ;;  %v2322_v61 = vcombine.low %v6865_v44, %v2151_v52 }
 0x21f   : > { %v2254_v62 = vcombine.high %v2246_v30, %v2246_v30  ;;  %v2255_v63 = vcombine.high %v2253_v32, %v2253_v32  ;;  %v2279_v1 = vrot.slane %v2271_v47, %v6700_v3  ;;  %v2286_v4 = vrot.slane %v2272_v59, %v6700_v3 }
 0x220   : > { %v2520_v5 = vsel %vm2519_vm2, %v2246_v30, 0.0  ;;  %v2527_v6 = vsel %vm2519_vm2, %v2253_v32, 0.0  ;;  %v6886_v7 = vrot.slane %v2304_v60, %v6700_v3  ;;  %v6889_v8 = vrot.slane %v2305_v54, %v6700_v3 }
 0x221   : > { %v2287_v9 = vcombine.high %v2279_v1, %v2279_v1  ;;  %v2288_v10 = vcombine.high %v2286_v4, %v2286_v4  ;;  %v2521_v12 = vrot.slane %v2520_v5, 4  ;;  %v2528_v13 = vrot.slane %v2527_v6, 4 }
 0x222   : > { %v2534_v31 = vsel %vm2519_vm2, %v2254_v62, 0.0  ;;  %v2541_v14 = vsel %vm2519_vm2, %v2255_v63, 0.0  ;;  %v2548_v15 = vsel %vm2519_vm2, %v2279_v1, 0.0  ;;  %v2555_v16 = vsel %vm2519_vm2, %v2286_v4, 0.0 }
 0x223   : > { %v2522_v23 = vadd.f32 %v2521_v12, %v2520_v5  ;;  %v2529_v17 = vadd.f32 %v2528_v13, %v2527_v6  ;;  %v2535_v19 = vrot.slane %v2534_v31, 4  ;;  %v2542_v20 = vrot.slane %v2541_v14, 4 }
 0x224   : > { %v2549_v21 = vrot.slane %v2548_v15, 4  ;;  %v2556_v22 = vrot.slane %v2555_v16, 4  ;;  %v2562_v29 = vsel %vm2519_vm2, %v2287_v9, 0.0  ;;  %v2569_v24 = vsel %vm2519_vm2, %v2288_v10, 0.0 }
 0x225   : > { %v2523_v25 = vrot.slane %v2522_v23, 2  ;;  %v2530_v27 = vrot.slane %v2529_v17, 2  ;;  %v2536_v55 = vadd.f32 %v2535_v19, %v2534_v31  ;;  %v2543_v28 = vadd.f32 %v2542_v20, %v2541_v14 }
 0x226   : > { %v2550_v33 = vadd.f32 %v2549_v21, %v2548_v15  ;;  %v2557_v36 = vadd.f32 %v2556_v22, %v2555_v16  ;;  %v2563_v38 = vrot.slane %v2562_v29, 4  ;;  %v2570_v41 = vrot.slane %v2569_v24, 4 }
 0x227   : > { %v2524_v46 = vadd.f32 %v2523_v25, %v2522_v23  ;;  %v6897_v45 = vadd.f32 %v2530_v27, %v2529_v17  ;;  %v2537_v50 = vrot.slane %v2536_v55, 2  ;;  %v2544_v52 = vrot.slane %v2543_v28, 2 }
 0x228   : > { %v2551_v57 = vrot.slane %v2550_v33, 2  ;;  %v2558_v30 = vrot.slane %v2557_v36, 2  ;;  %v2564_v32 = vadd.f32 %v2563_v38, %v2562_v29  ;;  %v2571_v47 = vadd.f32 %v2570_v41, %v2569_v24 }
 0x229   : > { %v2525_v59 = vrot.slane %v2524_v46, 1  ;;  %v2532_v60 = vrot.slane %v6897_v45, 1  ;;  %v2538_v54 = vadd.f32 %v2537_v50, %v2536_v55  ;;  %v6900_v62 = vadd.f32 %v2544_v52, %v2543_v28 }
 0x22a   : > { %v2552_v63 = vadd.f32 %v2551_v57, %v2550_v33  ;;  %v2559_v1 = vadd.f32 %v2558_v30, %v2557_v36  ;;  %v2565_v4 = vrot.slane %v2564_v32, 2  ;;  %v2572_v5 = vrot.slane %v2571_v47, 2 }
 0x22b   : > { %v2526_v6 = vadd.f32 %v2525_v59, %v2524_v46  ;;  %v2539_v9 = vrot.slane %v2538_v54, 1  ;;  %v2320_v10 = vcombine.high %v6886_v7, %v6886_v7  ;;  %v2321_v12 = vcombine.high %v6889_v8, %v6889_v8 }
 0x22c   : > { %v2553_v13 = vrot.slane %v2552_v63, 1  ;;  %v2560_v31 = vrot.slane %v2559_v1, 1  ;;  %v2566_v14 = vadd.f32 %v2565_v4, %v2564_v32  ;;  %v6906_v15 = vadd.f32 %v2572_v5, %v2571_v47 }
 0x22d   : > { %v2540_v16 = vadd.f32 %v2539_v9, %v2538_v54  ;;  %v2744_v23 = vpack.c.bf16 %v2526_v6, %v2526_v6  ;;  %v2329_v17 = vrot.slane %v2322_v61, %v6700_v3  ;;  %v2336_v19 = vrot.slane %v2153_v56, %v6700_v3 }
 0x22e   : > { %v2554_v20 = vadd.f32 %v2553_v13, %v2552_v63  ;;  %v6913_v21 = vadd.f32 %v2560_v31, %v2559_v1  ;;  %v2567_v22 = vrot.slane %v2566_v14, 1  ;;  %v2574_v29 = vrot.slane %v6906_v15, 1 }
 0x22f   : > { %v2746_v24 = vpack.c.bf16 %v2540_v16, %v2540_v16  ;;  %v6916_v25 = vunpack.c.l.b16 %v2744_v23  ;;  %v2337_v27 = vcombine.low %v2329_v17, %v2336_v19  ;;  %v2338_v55 = vcombine.high %v2329_v17, %v2336_v19 }
 0x230   : > { %v2568_v28 = vadd.f32 %v2567_v22, %v2566_v14  ;;  %v2748_v33 = vpack.c.bf16 %v2554_v20, %v2554_v20  ;;  %v2749_v61 = vpack.c.bf16 %v6913_v21, %v6913_v21  ;;  %v2355_v44 = vcombine.low %v6862_v42, %v6869_v51 }
 0x231   : > { %v6922_v56 = vunpack.c.l.b16 %v2746_v24  ;;  %v2345_v36 = vrot.slane %v2337_v27, %v6700_v3  ;;  %v2352_v38 = vrot.slane %v2338_v55, %v6700_v3  ;;  %v2369_v41 = vrot.slane %v2152_v49, %v6700_v3 }
 0x232   : > { %v2750_v46 = vpack.c.bf16 %v2568_v28, %v2568_v28  ;;  %v6930_v50 = vunpack.c.l.b16 %v2748_v33  ;;  %v2362_v52 = vrot.slane %v2355_v44, %v6700_v3  ;;  %v2576_v57 = vsel %vm2519_vm2, %v6886_v7, 0.0 }
 0x233   : > { %v2353_v30 = vcombine.high %v2345_v36, %v2345_v36  ;;  %v2354_v32 = vcombine.high %v2352_v38, %v2352_v38  ;;  %v2577_v47 = vrot.slane %v2576_v57, 4  ;;  %v2583_v59 = vsel %vm2519_vm2, %v6889_v8, 0.0 }
 0x234   : > { %v6937_v54 = vunpack.c.l.b16 %v2750_v46  ;;  %v2370_v63 = vcombine.low %v2362_v52, %v2369_v41  ;;  %v2371_v1 = vcombine.high %v2362_v52, %v2369_v41  ;;  %v2584_v42 = vrot.slane %v2583_v59, 4 }
 0x235   : > { %v2578_v49 = vadd.f32 %v2577_v47, %v2576_v57  ;;  %v2590_v4 = vsel %vm2519_vm2, %v2320_v10, 0.0  ;;  %v2597_v5 = vsel %vm2519_vm2, %v2321_v12, 0.0  ;;  %v2604_v6 = vsel %vm2519_vm2, %v2345_v36, 0.0 }
 0x236   : > { %v2378_v7 = vrot.slane %v2370_v63, %v6700_v3  ;;  %v2385_v9 = vrot.slane %v2371_v1, %v6700_v3  ;;  %v2585_v13 = vadd.f32 %v2584_v42, %v2583_v59  ;;  %v2591_v31 = vrot.slane %v2590_v4, 4 }
 0x237   : > { %v2579_v14 = vrot.slane %v2578_v49, 2  ;;  %v2598_v8 = vrot.slane %v2597_v5, 4  ;;  %v2605_v16 = vrot.slane %v2604_v6, 4  ;;  %v2611_v23 = vsel %vm2519_vm2, %v2352_v38, 0.0 }
 0x238   : > { %v2386_v17 = vcombine.high %v2378_v7, %v2378_v7  ;;  %v2387_v19 = vcombine.high %v2385_v9, %v2385_v9  ;;  %v2586_v20 = vrot.slane %v2585_v13, 2  ;;  %v2592_v22 = vadd.f32 %v2591_v31, %v2590_v4 }
 0x239   : > { %v2580_v10 = vadd.f32 %v2579_v14, %v2578_v49  ;;  %v2599_v24 = vadd.f32 %v2598_v8, %v2597_v5  ;;  %v2606_v12 = vadd.f32 %v2605_v16, %v2604_v6  ;;  %v2612_v27 = vrot.slane %v2611_v23, 4 }
 0x23a   : > { %v2587_v55 = vadd.f32 %v2586_v20, %v2585_v13  ;;  %v2593_v28 = vrot.slane %v2592_v22, 2  ;;  %v2618_v33 = vsel %vm2519_vm2, %v2353_v30, 0.0  ;;  %v2625_v44 = vsel %vm2519_vm2, %v2354_v32, 0.0 }
 0x23b   : > { %v2581_v36 = vrot.slane %v2580_v10, 1  ;;  %v2600_v41 = vrot.slane %v2599_v24, 2  ;;  %v2607_v46 = vrot.slane %v2606_v12, 2  ;;  %v2613_v52 = vadd.f32 %v2612_v27, %v2611_v23 }
 0x23c   : > { %v2588_v57 = vrot.slane %v2587_v55, 1  ;;  %v2594_v38 = vadd.f32 %v2593_v28, %v2592_v22  ;;  %v2619_v47 = vrot.slane %v2618_v33, 4  ;;  %v2626_v59 = vrot.slane %v2625_v44, 4 }
 0x23d   : > { %v2582_v63 = vadd.f32 %v2581_v36, %v2580_v10  ;;  %v6947_v1 = vadd.f32 %v2600_v41, %v2599_v24  ;;  %v2608_v42 = vadd.f32 %v2607_v46, %v2606_v12  ;;  %v2614_v49 = vrot.slane %v2613_v52, 2 }
 0x23e   : > { %v2595_v4 = vrot.slane %v2594_v38, 1  ;;  %v2620_v5 = vadd.f32 %v2619_v47, %v2618_v33  ;;  %v6949_v6 = vadd.f32 %v2626_v59, %v2625_v44  ;;  %v2632_v30 = vsel %vm2519_vm2, %v2378_v7, 0.0 }
 0x23f   : > { %v2609_v32 = vrot.slane %v2608_v42, 1  ;;  %v2633_v13 = vrot.slane %v2632_v30, 4  ;;  %v2639_v31 = vsel %vm2519_vm2, %v2385_v9, 0.0  ;;  %v2646_v14 = vsel %vm2519_vm2, %v2386_v17, 0.0 }
 0x240   : > { %v2596_v8 = vadd.f32 %v2595_v4, %v2594_v38  ;;  %v2621_v16 = vrot.slane %v2620_v5, 2  ;;  %v2640_v23 = vrot.slane %v2639_v31, 4  ;;  %v2647_v20 = vrot.slane %v2646_v14, 4 }
 0x241   : > { %v2610_v22 = vadd.f32 %v2609_v32, %v2608_v42  ;;  %v2634_v10 = vadd.f32 %v2633_v13, %v2632_v30  ;;  %v6955_v24 = vsel %vm2519_vm2, %v2387_v19, 0.0  ;;  %v2752_v12 = vpack.c.bf16 %v2582_v63, %v2582_v63 }
 0x242   : > { %v2622_v27 = vadd.f32 %v2621_v16, %v2620_v5  ;;  %v2641_v28 = vadd.f32 %v2640_v23, %v2639_v31  ;;  %v2648_v33 = vadd.f32 %v2647_v20, %v2646_v14  ;;  %v2654_v7 = vrot.slane %v6955_v24, 4 }
 0x243   : > { %v2635_v44 = vrot.slane %v2634_v10, 2  ;;  %v2754_v36 = vpack.c.bf16 %v2596_v8, %v2596_v8  ;;  %v2756_v9 = vpack.c.bf16 %v2610_v22, %v2610_v22  ;;  %v6958_v41 = vunpack.c.l.b16 %v2752_v12 }
 0x244   : > { %v2623_v17 = vrot.slane %v2622_v27, 1  ;;  %v2649_v46 = vrot.slane %v2648_v33, 2  ;;  %v2157_v38 = vcombine.low %v2005_v26, %v2006_v18  ;;  %v2158_v19 = vcombine.high %v2005_v26, %v2006_v18 }
 0x245   : > { %v2636_v47 = vadd.f32 %v2635_v44, %v2634_v10  ;;  %v6968_v59 = vunpack.c.l.b16 %v2754_v36  ;;  %v6970_v63 = vunpack.c.l.b16 %v2756_v9  ;;  %v2533_v42 = vadd.f32 %v2532_v60, %v6897_v45 }
 0x246   : > { %v6975_v4 = vadd.f32 %v2623_v17, %v2622_v27  ;;  %v6977_v5 = vadd.f32 %v2649_v46, %v2648_v33  ;;  %v2179_v30 = vrot.slane %v2157_v38, %v6700_v3  ;;  %v2186_v11 = vrot.slane %v2158_v19, %v6700_v3 }
 0x247   : > { %v2637_v0 = vrot.slane %v2636_v47, 1  ;;  %v2589_v26 = vadd.f32 %v2588_v57, %v2587_v55  ;;  %v2615_v18 = vadd.f32 %v2614_v49, %v2613_v52  ;;  %v2642_v32 = vrot.slane %v2641_v28, 2 }
 0x248   : > { %v2651_v13 = vrot.slane %v6977_v5, 1  ;;  %v2187_v31 = vcombine.low %v6754_v58, %v2179_v30  ;;  %v2188_v14 = vcombine.high %v6754_v58, %v2179_v30  ;;  %v2189_v45 = vcombine.low %v6757_v48, %v2186_v11 }
 0x249   : > { %v6985_v60 = vadd.f32 %v2637_v0, %v2636_v47  ;;  %v2190_v8 = vcombine.high %v6757_v48, %v2186_v11  ;;  %v2616_v16 = vrot.slane %v2615_v18, 1  ;;  %v2643_v23 = vadd.f32 %v2642_v32, %v2641_v28 }
 0x24a   : > { %v2197_v20 = vrot.slane %v2187_v31, %v6700_v3  ;;  %v2204_v55 = vrot.slane %v2189_v45, %v6700_v3  ;;  %v2211_v52 = vrot.slane %v2188_v14, %v6700_v3  ;;  %v2745_v57 = vpack.c.bf16 %v2533_v42, %v2533_v42 }
 0x24b   : > { %v2218_v49 = vrot.slane %v2190_v8, %v6700_v3  ;;  %v2617_v22 = vadd.f32 %v2616_v16, %v2615_v18  ;;  %v2644_v58 = vrot.slane %v2643_v23, 1  ;;  %v2753_v10 = vpack.c.bf16 %v2589_v26, %v2589_v26 }
 0x24c   : > { %v2220_v12 = vcombine.high %v2204_v55, %v2204_v55  ;;  %v2388_v27 = vcombine.low %v2154_v53, %v2197_v20  ;;  %v2402_v48 = vrot.slane %v2211_v52, %v6700_v3  ;;  %v5170_v28 = vcombine.high %v2197_v20, %v2211_v52 }
 0x24d   : > { %v2222_v33 = vcombine.high %v2218_v49, %v2218_v49  ;;  %v2435_v44 = vrot.slane %v2204_v55, %v6700_v3  ;;  %v2645_v36 = vadd.f32 %v2644_v58, %v2643_v23  ;;  %v2757_v9 = vpack.c.bf16 %v2617_v22, %v2617_v22 }
 0x24e   : > { %v2395_v17 = vrot.slane %v2388_v27, %v6700_v3  ;;  %v2428_v46 = vrot.slane %v5170_v28, %v6700_v3  ;;  %v2454_v38 = vcombine.low %v2218_v49, %v2220_v12  ;;  %v2881_v19 = vunpack.c.l.b16 %v2745_v57 }
 0x24f   : > { %v2468_v47 = vrot.slane %v2222_v33, %v6700_v3  ;;  %v2761_v42 = vpack.c.bf16 %v2645_v36, %v2645_v36  ;;  %v2885_v51 = vunpack.c.l.b16 %v2749_v61  ;;  %v2889_v53 = vunpack.c.l.b16 %v2753_v10 }
 0x250   : > { %v2403_v30 = vcombine.low %v2395_v17, %v2402_v48  ;;  %v2404_v11 = vcombine.high %v2395_v17, %v2402_v48  ;;  %v2436_v0 = vcombine.low %v2428_v46, %v2435_v44  ;;  %v2437_v26 = vcombine.high %v2428_v46, %v2435_v44 }
 0x251   : > { %v2461_v18 = vrot.slane %v2454_v38, %v6700_v3  ;;  %v2893_v32 = vunpack.c.l.b16 %v2757_v9  ;;  %v2897_v31 = vunpack.c.l.b16 %v2761_v42  ;;  %v2926_v14 = vsel %vm2912_vm3, %v2885_v51, %v2881_v19 }
 0x252   : > { %v2411_v45 = vrot.slane %v2403_v30, %v6700_v3  ;;  %v2418_v8 = vrot.slane %v2404_v11, %v6700_v3  ;;  %v2444_v16 = vrot.slane %v2436_v0, %v6700_v3  ;;  %v7009_v21 = vrot.slane %v2437_v26, %v6700_v3 }
 0x253   : > { %v2469_v61 = vcombine.low %v2461_v18, %v2468_v47  ;;  %v2470_v23 = vcombine.high %v2461_v18, %v2468_v47  ;;  %v2927_v20 = vsel %vm2914_vm4, %v2889_v53, %v2926_v14  ;;  %v2760_v55 = vpack.c.bf16 %v6985_v60, %v6985_v60 }
 0x254   : > { %v2419_v52 = vcombine.high %v2411_v45, %v2411_v45  ;;  %v2420_v57 = vcombine.high %v2418_v8, %v2418_v8  ;;  %v2452_v49 = vcombine.high %v2444_v16, %v2444_v16  ;;  %v2453_v22 = vcombine.high %v7009_v21, %v7009_v21 }
 0x255   : > { %v2477_v58 = vrot.slane %v2469_v61, %v6700_v3  ;;  %v2660_v10 = vsel %vm2519_vm2, %v2411_v45, 0.0  ;;  %v2667_v12 = vsel %vm2519_vm2, %v2418_v8, 0.0  ;;  %v2688_v27 = vsel %vm2519_vm2, %v2444_v16, 0.0 }
 0x256   : > { %v2661_v48 = vrot.slane %v2660_v10, 4  ;;  %v2668_v28 = vrot.slane %v2667_v12, 4  ;;  %v2674_v33 = vsel %vm2519_vm2, %v2419_v52, 0.0  ;;  %v7022_v60 = vsel %vm2519_vm2, %v2420_v57, 0.0 }
 0x257   : > { %v2485_v44 = vcombine.high %v2477_v58, %v2477_v58  ;;  %v2675_v36 = vrot.slane %v2674_v33, 4  ;;  %v2682_v9 = vrot.slane %v7022_v60, 4  ;;  %v2689_v17 = vrot.slane %v2688_v27, 4 }
 0x258   : > { %v2662_v46 = vadd.f32 %v2661_v48, %v2660_v10  ;;  %v2669_v38 = vadd.f32 %v2668_v28, %v2667_v12  ;;  %v2702_v19 = vsel %vm2519_vm2, %v2452_v49, 0.0  ;;  %v2716_v47 = vsel %vm2519_vm2, %v2477_v58, 0.0 }
 0x259   : > { %v2676_v42 = vadd.f32 %v2675_v36, %v2674_v33  ;;  %v2690_v51 = vadd.f32 %v2689_v17, %v2688_v27  ;;  %v2703_v53 = vrot.slane %v2702_v19, 4  ;;  %v2717_v30 = vrot.slane %v2716_v47, 4 }
 0x25a   : > { %v2663_v11 = vrot.slane %v2662_v46, 2  ;;  %v7028_v0 = vsel %vm2519_vm2, %v2485_v44, 0.0  ;;  %v7031_v26 = vrot.slane %v2470_v23, %v6700_v3  ;;  %v2670_v18 = vrot.slane %v2669_v38, 2 }
 0x25b   : > { %v2677_v14 = vrot.slane %v2676_v42, 2  ;;  %v2691_v45 = vrot.slane %v2690_v51, 2  ;;  %v7033_v8 = vadd.f32 %v2703_v53, %v2702_v19  ;;  %v2718_v16 = vadd.f32 %v2717_v30, %v2716_v47 }
 0x25c   : > { %v2664_v61 = vadd.f32 %v2663_v11, %v2662_v46  ;;  %v2731_v52 = vrot.slane %v7028_v0, 4  ;;  %v2671_v57 = vadd.f32 %v2670_v18, %v2669_v38  ;;  %v2695_v49 = vsel %vm2519_vm2, %v7009_v21, 0.0 }
 0x25d   : > { %v7038_v58 = vadd.f32 %v2677_v14, %v2676_v42  ;;  %v2692_v10 = vadd.f32 %v2691_v45, %v2690_v51  ;;  %v2705_v3 = vrot.slane %v7033_v8, 2  ;;  %v2696_v23 = vrot.slane %v2695_v49, 4 }
 0x25e   : > { %v2665_v12 = vrot.slane %v2664_v61, 1  ;;  %v2672_v27 = vrot.slane %v2671_v57, 1  ;;  %v2723_v48 = vsel %vm2519_vm2, %v7031_v26, 0.0  ;;  %v2928_v28 = vsel %vm2916_vm5, %v2893_v32, %v2927_v20 }
 0x25f   : > { %v2679_v33 = vrot.slane %v7038_v58, 1  ;;  %v2697_v44 = vadd.f32 %v2696_v23, %v2695_v49  ;;  %v2724_v36 = vrot.slane %v2723_v48, 4  ;;  %v2929_v17 = vsel %vm2918_vm6, %v2897_v31, %v2928_v28 }
 0x260   : > { %v2666_v46 = vadd.f32 %v2665_v12, %v2664_v61  ;;  %v2673_v38 = vadd.f32 %v2672_v27, %v2671_v57  ;;  %v2693_v19 = vrot.slane %v2692_v10, 1  ;;  %v2719_v47 = vrot.slane %v2718_v16, 2 }
 0x261   : > { %v2698_v42 = vrot.slane %v2697_v44, 2  ;;  %v2725_v51 = vadd.f32 %v2724_v36, %v2723_v48  ;;  %v2896_v53 = vunpack.c.l.b16 %v2760_v55  ;;  %v2913_v30 = vsel %vm2912_vm3, %v6930_v50, %v6916_v25 }
 0x262   : > { %v2765_v11 = vpack.c.bf16 %v2673_v38, %v2673_v38  ;;  %v2694_v32 = vadd.f32 %v2693_v19, %v2692_v10  ;;  %v2720_v20 = vadd.f32 %v2719_v47, %v2718_v16  ;;  %v2764_v18 = vpack.c.bf16 %v2666_v46, %v2666_v46 }
 0x263   : > { %v2699_v14 = vadd.f32 %v2698_v42, %v2697_v44  ;;  %v2726_v45 = vrot.slane %v2725_v51, 2  ;;  %v2915_v31 = vsel %vm2914_vm4, %v6958_v41, %v2913_v30  ;;  %v2486_v61 = vcombine.high %v7031_v26, %v7031_v26 }
 0x264   : > { %v2901_v57 = vunpack.c.l.b16 %v2765_v11  ;;  %v2721_v49 = vrot.slane %v2720_v20, 1  ;;  %v2768_v23 = vpack.c.bf16 %v2694_v32, %v2694_v32  ;;  %v2900_v55 = vunpack.c.l.b16 %v2764_v18 }
 0x265   : > { %v2700_v12 = vrot.slane %v2699_v14, 1  ;;  %v2727_v27 = vadd.f32 %v2726_v45, %v2725_v51  ;;  %v2917_v25 = vsel %vm2916_vm5, %v6970_v63, %v2915_v31  ;;  %v2546_v50 = vrot.slane %v6900_v62, 1 }
 0x266   : > { %v2930_v16 = vsel %vm2920_vm7, %v2901_v57, %v2929_v17  ;;  %v2722_v10 = vadd.f32 %v2721_v49, %v2720_v20  ;;  %v2904_v48 = vunpack.c.l.b16 %v2768_v23  ;;  %v2919_v41 = vsel %vm2918_vm6, %v2896_v53, %v2917_v25 }
 0x267   : > { %v2701_v28 = vadd.f32 %v2700_v12, %v2699_v14  ;;  %v2728_v26 = vrot.slane %v2727_v27, 1  ;;  %v2921_v44 = vsel %vm2920_vm7, %v2900_v55, %v2919_v41  ;;  %v2547_v36 = vadd.f32 %v2546_v50, %v6900_v62  ;;  %v5763_v41 = vld [vmem:[%s7740_s11 + $0x4] ss:$16 sps:$4 sm:$0xff]  }
 0x268   : > { %v2772_v46 = vpack.c.bf16 %v2722_v10, %v2722_v10  ;;  %v2923_v38 = vsel %vm2922_vm8, %v2904_v48, %v2921_v44  ;;  %v2575_v63 = vadd.f32 %v2574_v29, %v6906_v15  ;;  %v2602_v17 = vrot.slane %v6947_v1, 1 }
 0x269   : > { %v2729_v19 = vadd.f32 %v2728_v26, %v2727_v27  ;;  %v2769_v47 = vpack.c.bf16 %v2701_v28, %v2701_v28  ;;  %v2628_v42 = vrot.slane %v6949_v6, 2  ;;  %v2655_v51 = vadd.f32 %v2654_v7, %v6955_v24 }
 0x26a   : > { %v2908_v53 = vunpack.c.l.b16 %v2772_v46  ;;  %v2603_v62 = vadd.f32 %v2602_v17, %v6947_v1  ;;  %v2683_v30 = vadd.f32 %v2682_v9, %v7022_v60  ;;  %v2709_v15 = vsel %vm2519_vm2, %v2453_v22, 0.0 }
 0x26b   : > { %v2773_v29 = vpack.c.bf16 %v2729_v19, %v2729_v19  ;;  %v2905_v11 = vunpack.c.l.b16 %v2769_v47  ;;  %v2629_v32 = vadd.f32 %v2628_v42, %v6949_v6  ;;  %v2656_v24 = vrot.slane %v2655_v51, 2 }
 0x26c   : > { %v2925_v7 = vsel %vm2924_vm9, %v2908_v53, %v2923_v38  ;;  %v2684_v1 = vrot.slane %v2683_v30, 2  ;;  %v2710_v20 = vrot.slane %v2709_v15, 4  ;;  %v2737_v18 = vsel %vm2519_vm2, %v2486_v61, 0.0 }
 0x26d   : > { %v2909_v60 = vunpack.c.l.b16 %v2773_v29  ;;  %v2931_v9 = vsel %vm2922_vm8, %v2905_v11, %v2930_v16  ;;  %v2947_v21 = vpack.c.b16 %v2925_v7, %v2925_v7  ;;  %v2630_v14 = vrot.slane %v2629_v32, 1 }
 0x26e   : > { %v2657_v22 = vadd.f32 %v2656_v24, %v2655_v51  ;;  %v2685_v45 = vadd.f32 %v2684_v1, %v2683_v30  ;;  %v2711_v31 = vadd.f32 %v2710_v20, %v2709_v15  ;;  %v2738_v57 = vrot.slane %v2737_v18, 4  ;;  %v3232_v1 = vld [vmem:[%s658_s29] sm:$0xf]  ;;  %s638_s29 = scalar_lea.vmem [#allocation2], %s5016_s24  ;;  %s6003_s24 = scalar_lea.vmem %s6002_s3, 256 }
 0x26f   : > { %v2932_v6 = vsel %vm2924_vm9, %v2909_v60, %v2931_v9  ;;  %v2631_v49 = vadd.f32 %v2630_v14, %v2629_v32  ;;  %v2747_v23 = vpack.c.bf16 %v2547_v36, %v2547_v36  ;;  %v2751_v55 = vpack.c.bf16 %v2575_v63, %v2575_v63  ;;  %v5761_v20 = vld [vmem:[%s7740_s11] ss:$16 sps:$4 sm:$0xff]   ;;  %s4917_s22 = sshll.u32 %s638_s29, 4  ;;  %s4918_s22 = int_to_ptr.vmem [resolvable:$true] %s4917_s22 }
 0x270   : > { %v2948_v12 = vpack.c.b16 %v2932_v6, %v2932_v6  ;;  %v2658_v61 = vrot.slane %v2657_v22, 1  ;;  %v2686_v27 = vrot.slane %v2685_v45, 1  ;;  %v2712_v25 = vrot.slane %v2711_v31, 2  ;;  %s5997_s0 = scalar_lea.vmem %s4918_s22, 128  ;;  %p6004_p1 = scmp.lt.s32.totalorder %s4918_s22, %s6002_s3 }
 0x271   : > { %v2739_v50 = vadd.f32 %v2738_v57, %v2737_v18  ;;  %v2755_v16 = vpack.c.bf16 %v2603_v62, %v2603_v62  ;;  %v2759_v10 = vpack.c.bf16 %v2631_v49, %v2631_v49  ;;  %v2883_v48 = vunpack.c.l.b16 %v2747_v23  ;;  %p5998_p12 = scmp.ne.s32.totalorder %s4918_s22, %s5997_s0  ;;  %p6005_p2 = scmp.lt.s32.totalorder %s6003_s24, %s5997_s0 }
 0x272   : > { %3179 = vmatprep.mubr.bf16.mxu0 %v2948_v12  ;;  %v2659_v28 = vadd.f32 %v2658_v61, %v2657_v22  ;;  %v2687_v26 = vadd.f32 %v2686_v27, %v2685_v45  ;;  %v2713_v44 = vadd.f32 %v2712_v25, %v2711_v31  ;;  %v2887_v36 = vunpack.c.l.b16 %v2751_v55 }
 0x273   : > { %3180 = vmatmul.mubr.bf16.vlgmr.msra.gmra.mxu0 %v2947_v21  ;;  %v2740_v46 = vrot.slane %v2739_v50, 2  ;;  %v2891_v38 = vunpack.c.l.b16 %v2755_v16  ;;  %v2895_v63 = vunpack.c.l.b16 %v2759_v10  ;;  %v2652_v17 = vadd.f32 %v2651_v13, %v6977_v5  ;;  %v3227_v16 = vld [vmem:[%s654_s21] sm:$0xf]  ;;  %s4904_s21 = scalar_lea.sflag [#allocation3], %s636_s25  ;;  %p5999_p13 = pnand %p5998_p12, %p6200_p5 }
 0x274   : > { %v2714_v19 = vrot.slane %v2713_v44, 1  ;;  %v2763_v47 = vpack.c.bf16 %v2659_v28, %v2659_v28  ;;  %v2767_v42 = vpack.c.bf16 %v2687_v26, %v2687_v26  ;;  %v2940_v51 = vsel %vm2912_vm3, %v2887_v36, %v2883_v48  ;;  %3277 = vmatpush1.bf16.msra.mxu0 %v6828_v40  ;;  %3294 = vmatprep.mubr.bf16.mxu0 %v6059_v2  ;;  %v5766_v26 = vld [vmem:[%s7740_s11 + $0xc] ss:$16 sps:$4 sm:$0xff]   ;;  %v5769_v36 = vld [vmem:[%s7742_s13 + $0x4] ss:$16 sps:$4 sm:$0xff]   ;;  %p6006_p3 = por %p6005_p2, %p6004_p1 }
 0x275   : > { %v2741_v53 = vadd.f32 %v2740_v46, %v2739_v50  ;;  %v2941_v62 = vsel %vm2914_vm4, %v2891_v38, %v2940_v51  ;;  %v2680_v30 = vadd.f32 %v2679_v33, %v7038_v58  ;;  %v2706_v5 = vadd.f32 %v2705_v3, %v7033_v8  ;;  %3381 = vmatprep.subr.bf16.mxu0 %v5763_v41  ;;  %v5772_v46 = vld [vmem:[%s7742_s13 + $0xc] ss:$16 sps:$4 sm:$0xff]   ;;  %v5770_v38 = vld [vmem:[%s7742_s13 + $0x8] ss:$16 sps:$4 sm:$0xff]   ;;  %p6000_p0 = pneg %p5999_p13 }
 0x276   : > { %v2715_v40 = vadd.f32 %v2714_v19, %v2713_v44  ;;  %v2899_v13 = vunpack.c.l.b16 %v2763_v47  ;;  %v2903_v15 = vunpack.c.l.b16 %v2767_v42  ;;  %v2942_v29 = vsel %vm2916_vm5, %v2895_v63, %v2941_v62  ;;  %v5764_v44 = vld [vmem:[%s7740_s11 + $0x8] ss:$16 sps:$4 sm:$0xff]   ;;  %v5778_v63 = vld [vmem:[%s7744_s15 + $0x2e4] ss:$16 sps:$4 sm:$0xff]   ;;  %v2840_v62 = vld [vmem:[%s7739_s10] sm:$0x1] }
 0x277   : > { %v2742_v11 = vrot.slane %v2741_v53, 1  ;;  %v2707_v32 = vrot.slane %v2706_v5, 1  ;;  %v2732_v58 = vadd.f32 %v2731_v52, %v7028_v0  ;;  %v2758_v8 = vpack.c.bf16 %v6975_v4, %v6975_v4  ;;  %p6007_p4 = pnand %p6006_p3, %p6000_p0 }
 0x278   : > { %v2771_v3 = vpack.c.bf16 %v2715_v40, %v2715_v40  ;;  %v2943_v33 = vsel %vm2918_vm6, %v2899_v13, %v2942_v29  ;;  %v2762_v24 = vpack.c.bf16 %v2652_v17, %v2652_v17  ;;  %v2766_v7 = vpack.c.bf16 %v2680_v30, %v2680_v30 }
 0x279   : > { %v2743_v18 = vadd.f32 %v2742_v11, %v2741_v53  ;;  %v2944_v60 = vsel %vm2920_vm7, %v2903_v15, %v2943_v33  ;;  %v2708_v9 = vadd.f32 %v2707_v32, %v2706_v5  ;;  %v2733_v21 = vrot.slane %v2732_v58, 2 }
 0x27a   : > { %v2907_v14 = vunpack.c.l.b16 %v2771_v3  ;;  %v2894_v0 = vunpack.c.l.b16 %v2758_v8  ;;  %v2902_v52 = vunpack.c.l.b16 %v2766_v7  ;;  %v2933_v31 = vsel %vm2912_vm3, %v6937_v54, %v6922_v56 }
 0x27b   : > { %v2775_v4 = vpack.c.bf16 %v2743_v18, %v2743_v18  ;;  %v2734_v22 = vadd.f32 %v2733_v21, %v2732_v58  ;;  %v2770_v45 = vpack.c.bf16 %v2708_v9, %v2708_v9  ;;  %5208 = vmatmul.mubr.msk.bf16.vlgmr.msra.gmra.mxu0 %vm3245_vm10, %v3232_v1  ;;  %v2898_v6 = vunpack.c.l.b16 %v2762_v24  ;;  %v5773_v9 = vld [vmem:[%s7744_s15 + $0xe0] ss:$16 sps:$4 sm:$0xff]  }
 0x27c   : > { %v2945_v57 = vsel %vm2922_vm8, %v2907_v14, %v2944_v60  ;;  %v2934_v49 = vsel %vm2914_vm4, %v6968_v59, %v2933_v31  ;;  %3382 = vmatpush1.bf16.msra.mxu0 %v5761_v20  ;;  %3399 = vmatprep.mubr.bf16.mxu0 %v6059_v2  ;;  %v2841_v5 = vmul.f32 3.0, %v2840_v62  ;;  %v5776_v21 = vld [vmem:[%s7744_s15 + $0x2e0] ss:$16 sps:$4 sm:$0xff]   ;;  %v5823_v62 = vld [vmem:[%s7744_s15 + $0x1e4] ss:$16 sps:$4 sm:$0xff]  }
 0x27d   : > { %v2911_v23 = vunpack.c.l.b16 %v2775_v4  ;;  %v2735_v55 = vrot.slane %v2734_v22, 1  ;;  %v2906_v12 = vunpack.c.l.b16 %v2770_v45  ;;  %v2935_v61 = vsel %vm2916_vm5, %v2894_v0, %v2934_v49  ;;  %3491 = vmatprep.subr.bf16.mxu0 %v5769_v36  ;;  %v5781_v0 = vld [vmem:[%s7744_s15 + $0xc4] ss:$16 sps:$4 sm:$0xff]   ;;  %v5782_v45 = vld [vmem:[%s7744_s15 + $0x2c0] ss:$16 sps:$4 sm:$0xff]  }
 0x27e   : > { %v2936_v56 = vsel %vm2918_vm6, %v2898_v6, %v2935_v61  ;;  %v2846_v29 = vrot.slane %v2841_v5, %v6468_v37  ;;  %v5790_v6 = vld [vmem:[%s7744_s15 + $0x2a4] ss:$16 sps:$4 sm:$0xff]   ;;  %v5821_v5 = vld [vmem:[%s7744_s15 + $0x1e0] ss:$16 sps:$4 sm:$0xff]  }
 0x27f   : > { %v2946_v54 = vsel %vm2924_vm9, %v2911_v23, %v2945_v57  ;;  %v2736_v27 = vadd.f32 %v2735_v55, %v2734_v22  ;;  %v2937_v59 = vsel %vm2920_vm7, %v2902_v52, %v2936_v56  ;;  %v5784_v52 = vld [vmem:[%s7744_s15 + $0x2c4] ss:$16 sps:$4 sm:$0xff]   ;;  %v5779_v22 = vld [vmem:[%s7744_s15 + $0xc0] ss:$16 sps:$4 sm:$0xff]  }
 0x280   : > { %v2950_v25 = vpack.c.b16 %v2946_v54, %v2946_v54  ;;  %v2938_v50 = vsel %vm2922_vm8, %v2906_v12, %v2937_v59  ;;  %v5787_v57 = vld [vmem:[%s7744_s15 + $0xa4] ss:$16 sps:$4 sm:$0xff]   ;;  %v5785_v23 = vld [vmem:[%s7744_s15 + $0xa0] ss:$16 sps:$4 sm:$0xff]  }
 0x281   : > { %v2774_v10 = vpack.c.bf16 %v2736_v27, %v2736_v27  ;;  %v5788_v55 = vld [vmem:[%s7744_s15 + $0x2a0] ss:$16 sps:$4 sm:$0xff]   ;;  %v5793_v61 = vld [vmem:[%s7744_s15 + $0x84] ss:$16 sps:$4 sm:$0xff]  }
 0x282   : > { %3219 = vmatprep.mubr.bf16.mxu1 %v2950_v25  ;;  %v5796_v56 = vld [vmem:[%s7744_s15 + $0x284] ss:$16 sps:$4 sm:$0xff]   ;;  %v5791_v59 = vld [vmem:[%s7744_s15 + $0x80] ss:$16 sps:$4 sm:$0xff]  }
 0x283   : > { %v2910_v48 = vunpack.c.l.b16 %v2774_v10  ;;  %5215 = vmatmul.mubr.msk.bf16.vlgmr.msra.gmra.mxu0 %vm702_vm0, %v3227_v16  ;;  %v5794_v25 = vld [vmem:[%s7744_s15 + $0x280] ss:$16 sps:$4 sm:$0xff]   ;;  %v5802_v10 = vld [vmem:[%s7744_s15 + $0x264] ss:$16 sps:$4 sm:$0xff]  }
 0x284   : > { %3509 = vmatprep.mubr.bf16.mxu0 %v6059_v2  ;;  %v5808_v36 = vld [vmem:[%s7744_s15 + $0x244] ss:$16 sps:$4 sm:$0xff]  }
 0x285   : > { %v2939_v41 = vsel %vm2924_vm9, %v2910_v48, %v2938_v50 }
 0x286   : > { %v2949_v28 = vpack.c.b16 %v2939_v41, %v2939_v41 }
 0x288   : > { %3220 = vmatmul.mubr.bf16.vlgmr.msra.gmra.mxu1 %v2949_v28  ;;  %v5797_v28 = vld [vmem:[%s7744_s15 + $0x60] ss:$16 sps:$4 sm:$0xff]  }
 0x289   : > { %3318 = vmatpush1.bf16.msra.mxu1 %v6832_v43  ;;  %3335 = vmatprep.mubr.bf16.mxu1 %v6059_v2  ;;  %v5767_v43 = vld [vmem:[%s7742_s13] ss:$16 sps:$4 sm:$0xff]  }
 0x28a   : > { %3422 = vmatprep.subr.bf16.mxu1 %v5766_v26  ;;  %3492 = vmatpush1.bf16.msra.mxu0 %v5767_v43  ;;  %v5800_v26 = vld [vmem:[%s7744_s15 + $0x260] ss:$16 sps:$4 sm:$0xff]   ;;  %v5805_v43 = vld [vmem:[%s7744_s15 + $0x44] ss:$16 sps:$4 sm:$0xff]  }
 0x290   : > { %5210 = vmatmul.mubr.msk.bf16.vlgmr.msra.gmra.mxu1 %vm3245_vm10, %v3232_v1 }
 0x291   : > { %3423 = vmatpush1.bf16.msra.mxu1 %v5764_v44  ;;  %3440 = vmatprep.mubr.bf16.mxu1 %v6059_v2 }
 0x292   : > { %3532 = vmatprep.subr.bf16.mxu1 %v5772_v46  ;;  %v5803_v46 = vld [vmem:[%s7744_s15 + $0x40] ss:$16 sps:$4 sm:$0xff]  }
 0x298   : > { %5216 = vmatmul.mubr.msk.bf16.vlgmr.msra.gmra.mxu1 %vm702_vm0, %v3227_v16  ;;  %v5799_v16 = vld [vmem:[%s7744_s15 + $0x64] ss:$16 sps:$4 sm:$0xff]  }
 0x299   : > { %3550 = vmatprep.mubr.bf16.mxu1 %v6059_v2  ;;  %3533 = vmatpush1.bf16.msra.mxu1 %v5770_v38  ;;  %v5775_v2 = vld [vmem:[%s7744_s15 + $0xe4] ss:$16 sps:$4 sm:$0xff]   ;;  %v5806_v38 = vld [vmem:[%s7744_s15 + $0x240] ss:$16 sps:$4 sm:$0xff]  }
 0x29a   : > { %4387 = vmatprep.subr.bf16.mxu0 %v5775_v2  ;;  %4428 = vmatprep.subr.bf16.mxu1 %v5778_v63  ;;  %v5811_v2 = vld [vmem:[%s7744_s15 + $0x24] ss:$16 sps:$4 sm:$0xff]  }
 0x29b   : > { %v5814_v63 = vld [vmem:[%s7744_s15 + $0x224] ss:$16 sps:$4 sm:$0xff]  }
 0x333   : > { %v5404_v17 = vpop.f32.mrf.mxu0 }
 0x335   : > { %v5405_v19 = vpop.f32.mrf.mxu0 }
 0x336   : > { %v5406_v11 = vadd.f32 %v5405_v19, %v5404_v17  ;;  %v5809_v17 = vld [vmem:[%s7744_s15 + $0x20] ss:$16 sps:$4 sm:$0xff]  }
 0x337   : > { %v5407_v47 = vpop.f32.mrf.mxu0  ;;  %v5812_v19 = vld [vmem:[%s7744_s15 + $0x220] ss:$16 sps:$4 sm:$0xff]  }
 0x338   : > { %v3182_v33 = vadd.f32 %v5406_v11, %v2846_v29  ;;  %v5817_v47 = vld [vmem:[%s7744_s15 + $0x4] ss:$16 sps:$4 sm:$0xff]   ;;  %v5827_v11 = vld [vmem:[%s7744_s15 + $0x1c0] ss:$16 sps:$4 sm:$0xff]  }
 0x339   : > { %v5408_v42 = vpop.f32.mrf.mxu0  ;;  %v5832_v29 = vld [vmem:[%s7744_s15 + $0x3c4] ss:$16 sps:$4 sm:$0xff]  }
 0x33a   : > { %v5820_v42 = vld [vmem:[%s7744_s15 + $0x204] ss:$16 sps:$4 sm:$0xff]  }
 0x33b   : > { %v3296_v51 = vpop.f32.mrf.mxu0 }
 0x33d   : > { %v3298_v53 = vpop.f32.mrf.mxu0 }
 0x33f   : > { %v3300_v30 = vpop.f32.mrf.mxu0 }
 0x340   : > { %v5826_v30 = vld [vmem:[%s7744_s15 + $0x3e4] ss:$16 sps:$4 sm:$0xff]  }
 0x341   : > { %v3301_v40 = vpop.f32.mrf.mxu0 }
 0x342   : > { %v5824_v40 = vld [vmem:[%s7744_s15 + $0x3e0] ss:$16 sps:$4 sm:$0xff]  }
 0x343   : > { %v3401_v13 = vpop.f32.mrf.mxu0 }
 0x344   : > { %v7175_v15 = vadd.f32 %v3401_v13, %v3296_v51  ;;  %v5815_v51 = vld [vmem:[%s7744_s15] ss:$16 sps:$4 sm:$0xff]   ;;  %v5829_v13 = vld [vmem:[%s7744_s15 + $0x1c4] ss:$16 sps:$4 sm:$0xff]  }
 0x345   : > { %v3403_v32 = vpop.f32.mrf.mxu0 }
 0x346   : > { %v7178_v58 = vadd.f32 %v3403_v32, %v3298_v53  ;;  %v5818_v53 = vld [vmem:[%s7744_s15 + $0x200] ss:$16 sps:$4 sm:$0xff]  }
 0x347   : > { %v3405_v8 = vpop.f32.mrf.mxu0  ;;  %v5830_v32 = vld [vmem:[%s7744_s15 + $0x3c0] ss:$16 sps:$4 sm:$0xff]  }
 0x348   : > { %v5426_v3 = vpop.f32.mrf.mxu1  ;;  %v5835_v8 = vld [vmem:[%s7744_s15 + $0x1a4] ss:$16 sps:$4 sm:$0xff]  }
 0x349   : > { %v3406_v24 = vpop.f32.mrf.mxu0 }
 0x34a   : > { %v5427_v7 = vpop.f32.mrf.mxu1  ;;  %v5836_v24 = vld [vmem:[%s7744_s15 + $0x3a0] ss:$16 sps:$4 sm:$0xff]  }
 0x34b   : > { %v5428_v1 = vadd.f32 %v5427_v7, %v5426_v3  ;;  %v5838_v3 = vld [vmem:[%s7744_s15 + $0x3a4] ss:$16 sps:$4 sm:$0xff]  }
 0x34c   : > { %v5429_v20 = vpop.f32.mrf.mxu1  ;;  %v5841_v7 = vld [vmem:[%s7744_s15 + $0x184] ss:$16 sps:$4 sm:$0xff]  }
 0x34d   : > { %v3222_v18 = vadd.f32 %v5428_v1, %v3182_v33  ;;  %v5833_v33 = vld [vmem:[%s7744_s15 + $0x1a0] ss:$16 sps:$4 sm:$0xff]   ;;  %v5844_v1 = vld [vmem:[%s7744_s15 + $0x384] ss:$16 sps:$4 sm:$0xff]  }
 0x34e   : > { %v5430_v60 = vpop.f32.mrf.mxu1  ;;  %v5839_v20 = vld [vmem:[%s7744_s15 + $0x180] ss:$16 sps:$4 sm:$0xff]  }
 0x34f   : > { %v3449_v14 = vpack.c.bf16 %v3222_v18, %v3222_v18  ;;  %v5842_v18 = vld [vmem:[%s7744_s15 + $0x380] ss:$16 sps:$4 sm:$0xff]   ;;  %v5847_v60 = vld [vmem:[%s7744_s15 + $0x164] ss:$16 sps:$4 sm:$0xff]  }
 0x350   : > { %v3337_v4 = vpop.f32.mrf.mxu1 }
 0x351   : > { %5221 = vmatmul.mubr.msk.bf16.vlgmr.msra.gmra.mxu0 %vm702_vm0, %v3449_v14  ;;  %5222 = vmatmul.mubr.msk.bf16.vlgmr.msra.gmra.mxu1 %vm702_vm0, %v3449_v14  ;;  %v5848_v14 = vld [vmem:[%s7744_s15 + $0x360] ss:$16 sps:$4 sm:$0xff]  }
 0x352   : > { %4388 = vmatpush1.bf16.msra.mxu0 %v5773_v9  ;;  %4429 = vmatpush1.bf16.msra.mxu1 %v5776_v21  ;;  %v3339_v31 = vpop.f32.mrf.mxu1  ;;  %v5850_v9 = vld [vmem:[%s7744_s15 + $0x364] ss:$16 sps:$4 sm:$0xff]   ;;  %v5845_v21 = vld [vmem:[%s7744_s15 + $0x160] ss:$16 sps:$4 sm:$0xff]  }
 0x353   : > { %4389 = vmatprep.subr.bf16.mxu0 %v5781_v0  ;;  %4430 = vmatprep.subr.bf16.mxu1 %v5784_v52  ;;  %v5853_v0 = vld [vmem:[%s7744_s15 + $0x144] ss:$16 sps:$4 sm:$0xff]  }
 0x354   : > { %v3341_v49 = vpop.f32.mrf.mxu1  ;;  %v5856_v52 = vld [vmem:[%s7744_s15 + $0x344] ss:$16 sps:$4 sm:$0xff]  }
 0x355   : > { %v5865_v49 = vld [vmem:[%s7744_s15 + $0x104] ss:$16 sps:$4 sm:$0xff]  }
 0x356   : > { %4390 = vmatpush1.bf16.msra.mxu0 %v5779_v22  ;;  %4431 = vmatpush1.bf16.msra.mxu1 %v5782_v45  ;;  %v3342_v12 = vpop.f32.mrf.mxu1  ;;  %v5854_v22 = vld [vmem:[%s7744_s15 + $0x340] ss:$16 sps:$4 sm:$0xff]   ;;  %v5859_v45 = vld [vmem:[%s7744_s15 + $0x124] ss:$16 sps:$4 sm:$0xff]  }
 0x357   : > { %4391 = vmatprep.subr.bf16.mxu0 %v5787_v57  ;;  %4432 = vmatprep.subr.bf16.mxu1 %v5790_v6  ;;  %v5857_v57 = vld [vmem:[%s7744_s15 + $0x120] ss:$16 sps:$4 sm:$0xff]  }
 0x358   : > { %v3442_v54 = vpop.f32.mrf.mxu1  ;;  %v5860_v6 = vld [vmem:[%s7744_s15 + $0x320] ss:$16 sps:$4 sm:$0xff]  }
 0x359   : > { %v7218_v27 = vadd.f32 %v3442_v54, %v3337_v4  ;;  %v5851_v4 = vld [vmem:[%s7744_s15 + $0x140] ss:$16 sps:$4 sm:$0xff]  }
 0x35a   : > { %4392 = vmatpush1.bf16.msra.mxu0 %v5785_v23  ;;  %4433 = vmatpush1.bf16.msra.mxu1 %v5788_v55  ;;  %v3444_v50 = vpop.f32.mrf.mxu1  ;;  %v5868_v23 = vld [vmem:[%s7744_s15 + $0x304] ss:$16 sps:$4 sm:$0xff]   ;;  %v5863_v55 = vld [vmem:[%s7744_s15 + $0x100] ss:$16 sps:$4 sm:$0xff]  }
 0x35b   : > { %4393 = vmatprep.subr.bf16.mxu0 %v5793_v61  ;;  %4434 = vmatprep.subr.bf16.mxu1 %v5796_v56  ;;  %v7232_v48 = vadd.f32 %v3444_v50, %v3339_v31  ;;  %v5862_v31 = vld [vmem:[%s7744_s15 + $0x324] ss:$16 sps:$4 sm:$0xff]   ;;  %v5866_v12 = vld [vmem:[%s7744_s15 + $0x300] ss:$16 sps:$4 sm:$0xff]   ;;  %v5871_v61 = vld [vmem:[%s7744_s15 + $0xec] ss:$16 sps:$4 sm:$0xff]  }
 0x35c   : > { %v3446_v41 = vpop.f32.mrf.mxu1  ;;  %v5874_v56 = vld [vmem:[%s7744_s15 + $0x2ec] ss:$16 sps:$4 sm:$0xff]   ;;  %v3563_v54 = vld [vmem:[%s7743_s14] sm:$0xf] }
 0x35e   : > { %4394 = vmatpush1.bf16.msra.mxu0 %v5791_v59  ;;  %4435 = vmatpush1.bf16.msra.mxu1 %v5794_v25  ;;  %v3447_v44 = vpop.f32.mrf.mxu1  ;;  %v3568_v59 = vrot.slane %v3563_v54, %v6468_v37  ;;  %v3576_v25 = vrot.slane %v3563_v54, %v6471_v39 }
 0x35f   : > { %4395 = vmatprep.subr.bf16.mxu0 %v5799_v16  ;;  %4436 = vmatprep.subr.bf16.mxu1 %v5802_v10 }
 0x362   : > { %4396 = vmatpush1.bf16.msra.mxu0 %v5797_v28  ;;  %4437 = vmatpush1.bf16.msra.mxu1 %v5800_v26  ;;  %v3572_v28 = vrot.slane %v3563_v54, %v6462_v34  ;;  %v3580_v26 = vrot.slane %v3563_v54, %v6465_v35  ;;  %v5922_v54 = vld [vmem:[%s7744_s15 + $0x3ec] ss:$16 sps:$4 sm:$0xff]  }
 0x363   : > { %4397 = vmatprep.subr.bf16.mxu0 %v5805_v43  ;;  %4438 = vmatprep.subr.bf16.mxu1 %v5808_v36 }
 0x366   : > { %4398 = vmatpush1.bf16.msra.mxu0 %v5803_v46  ;;  %4439 = vmatpush1.bf16.msra.mxu1 %v5806_v38 }
 0x367   : > { %4399 = vmatprep.subr.bf16.mxu0 %v5811_v2  ;;  %4440 = vmatprep.subr.bf16.mxu1 %v5814_v63 }
 0x36a   : > { %4400 = vmatpush1.bf16.msra.mxu0 %v5809_v17  ;;  %4441 = vmatpush1.bf16.msra.mxu1 %v5812_v19 }
 0x36b   : > { %4401 = vmatprep.subr.bf16.mxu0 %v5817_v47  ;;  %4442 = vmatprep.subr.bf16.mxu1 %v5820_v42 }
 0x36e   : > { %4402 = vmatpush1.bf16.msra.mxu0 %v5815_v51  ;;  %4443 = vmatpush1.bf16.msra.mxu1 %v5818_v53 }
 0x36f   : > { %4403 = vmatprep.subr.bf16.mxu0 %v5823_v62  ;;  %4444 = vmatprep.subr.bf16.mxu1 %v5826_v30 }
 0x372   : > { %4404 = vmatpush2.bf16.msra.mxu0 %v5821_v5  ;;  %4445 = vmatpush2.bf16.msra.mxu1 %v5824_v40  ;;  %v5869_v40 = vld [vmem:[%s7744_s15 + $0xe8] ss:$16 sps:$4 sm:$0xff]  }
 0x373   : > { %4405 = vmatprep.subr.bf16.mxu0 %v5829_v13  ;;  %4446 = vmatprep.subr.bf16.mxu1 %v5832_v29  ;;  %v5877_v29 = vld [vmem:[%s7744_s15 + $0xcc] ss:$16 sps:$4 sm:$0xff]  }
 0x376   : > { %4406 = vmatpush2.bf16.msra.mxu0 %v5827_v11  ;;  %4447 = vmatpush2.bf16.msra.mxu1 %v5830_v32  ;;  %v5880_v11 = vld [vmem:[%s7744_s15 + $0x2cc] ss:$16 sps:$4 sm:$0xff]   ;;  %v5875_v32 = vld [vmem:[%s7744_s15 + $0xc8] ss:$16 sps:$4 sm:$0xff]  }
 0x377   : > { %4407 = vmatprep.subr.bf16.mxu0 %v5835_v8  ;;  %4448 = vmatprep.subr.bf16.mxu1 %v5838_v3  ;;  %v5878_v8 = vld [vmem:[%s7744_s15 + $0x2c8] ss:$16 sps:$4 sm:$0xff]   ;;  %v5883_v3 = vld [vmem:[%s7744_s15 + $0xac] ss:$16 sps:$4 sm:$0xff]  }
 0x37a   : > { %4408 = vmatpush2.bf16.msra.mxu0 %v5833_v33  ;;  %4449 = vmatpush2.bf16.msra.mxu1 %v5836_v24  ;;  %v5886_v33 = vld [vmem:[%s7744_s15 + $0x2ac] ss:$16 sps:$4 sm:$0xff]   ;;  %v5881_v24 = vld [vmem:[%s7744_s15 + $0xa8] ss:$16 sps:$4 sm:$0xff]  }
 0x37b   : > { %4409 = vmatprep.subr.bf16.mxu0 %v5841_v7  ;;  %4450 = vmatprep.subr.bf16.mxu1 %v5844_v1  ;;  %v5884_v7 = vld [vmem:[%s7744_s15 + $0x2a8] ss:$16 sps:$4 sm:$0xff]   ;;  %v5889_v1 = vld [vmem:[%s7744_s15 + $0x8c] ss:$16 sps:$4 sm:$0xff]  }
 0x37e   : > { %4410 = vmatpush2.bf16.msra.mxu0 %v5839_v20  ;;  %4451 = vmatpush2.bf16.msra.mxu1 %v5842_v18  ;;  %v5892_v20 = vld [vmem:[%s7744_s15 + $0x28c] ss:$16 sps:$4 sm:$0xff]   ;;  %v5887_v18 = vld [vmem:[%s7744_s15 + $0x88] ss:$16 sps:$4 sm:$0xff]  }
 0x37f   : > { %4411 = vmatprep.subr.bf16.mxu0 %v5847_v60  ;;  %4452 = vmatprep.subr.bf16.mxu1 %v5850_v9  ;;  %v5890_v60 = vld [vmem:[%s7744_s15 + $0x288] ss:$16 sps:$4 sm:$0xff]   ;;  %v5895_v9 = vld [vmem:[%s7744_s15 + $0x6c] ss:$16 sps:$4 sm:$0xff]  }
 0x382   : > { %4412 = vmatpush2.bf16.msra.mxu0 %v5845_v21  ;;  %4453 = vmatpush2.bf16.msra.mxu1 %v5848_v14  ;;  %v5898_v21 = vld [vmem:[%s7744_s15 + $0x26c] ss:$16 sps:$4 sm:$0xff]   ;;  %v5893_v14 = vld [vmem:[%s7744_s15 + $0x68] ss:$16 sps:$4 sm:$0xff]  }
 0x383   : > { %4413 = vmatprep.subr.bf16.mxu0 %v5853_v0  ;;  %4454 = vmatprep.subr.bf16.mxu1 %v5856_v52  ;;  %v5896_v0 = vld [vmem:[%s7744_s15 + $0x268] ss:$16 sps:$4 sm:$0xff]   ;;  %v5901_v52 = vld [vmem:[%s7744_s15 + $0x4c] ss:$16 sps:$4 sm:$0xff]  }
 0x386   : > { %4414 = vmatpush2.bf16.msra.mxu0 %v5851_v4  ;;  %4455 = vmatpush2.bf16.msra.mxu1 %v5854_v22  ;;  %v5904_v4 = vld [vmem:[%s7744_s15 + $0x24c] ss:$16 sps:$4 sm:$0xff]   ;;  %v5899_v22 = vld [vmem:[%s7744_s15 + $0x48] ss:$16 sps:$4 sm:$0xff]  }
 0x387   : > { %4415 = vmatprep.subr.bf16.mxu0 %v5859_v45  ;;  %4456 = vmatprep.subr.bf16.mxu1 %v5862_v31  ;;  %v5902_v45 = vld [vmem:[%s7744_s15 + $0x248] ss:$16 sps:$4 sm:$0xff]   ;;  %v5907_v31 = vld [vmem:[%s7744_s15 + $0x2c] ss:$16 sps:$4 sm:$0xff]  }
 0x38a   : > { %4416 = vmatpush2.bf16.msra.mxu0 %v5857_v57  ;;  %4457 = vmatpush2.bf16.msra.mxu1 %v5860_v6  ;;  %v5910_v57 = vld [vmem:[%s7744_s15 + $0x22c] ss:$16 sps:$4 sm:$0xff]   ;;  %v5905_v6 = vld [vmem:[%s7744_s15 + $0x28] ss:$16 sps:$4 sm:$0xff]  }
 0x38b   : > { %4417 = vmatprep.subr.bf16.mxu0 %v5865_v49  ;;  %4458 = vmatprep.subr.bf16.mxu1 %v5868_v23  ;;  %v5908_v49 = vld [vmem:[%s7744_s15 + $0x228] ss:$16 sps:$4 sm:$0xff]   ;;  %v5913_v23 = vld [vmem:[%s7744_s15 + $0xc] ss:$16 sps:$4 sm:$0xff]  }
 0x38e   : > { %4418 = vmatpush2.bf16.msra.mxu0 %v5863_v55  ;;  %4459 = vmatpush2.bf16.msra.mxu1 %v5866_v12  ;;  %v5916_v55 = vld [vmem:[%s7744_s15 + $0x20c] ss:$16 sps:$4 sm:$0xff]   ;;  %v5911_v12 = vld [vmem:[%s7744_s15 + $0x8] ss:$16 sps:$4 sm:$0xff]  }
 0x38f   : > { %4469 = vmatprep.subr.bf16.mxu0 %v5871_v61  ;;  %4510 = vmatprep.subr.bf16.mxu1 %v5874_v56  ;;  %v5914_v61 = vld [vmem:[%s7744_s15 + $0x208] ss:$16 sps:$4 sm:$0xff]   ;;  %v5919_v56 = vld [vmem:[%s7744_s15 + $0x1ec] ss:$16 sps:$4 sm:$0xff]  }
 0x411   : > { %v3511_v50 = vpop.f32.mrf.mxu0  ;;  %v3552_v16 = vpop.f32.mrf.mxu1 }
 0x412   : > { %v3559_v10 = vadd.f32 %v3511_v50, %v7175_v15  ;;  %v3561_v41 = vadd.f32 %v3552_v16, %v7218_v27  ;;  %v5925_v50 = vld [vmem:[%s7744_s15 + $0x1cc] ss:$16 sps:$4 sm:$0xff]  }
 0x413   : > { %v3513_v44 = vpop.f32.mrf.mxu0  ;;  %v3554_v43 = vpop.f32.mrf.mxu1  ;;  %v5928_v16 = vld [vmem:[%s7744_s15 + $0x3cc] ss:$16 sps:$4 sm:$0xff]  }
 0x414   : > { %v3585_v36 = vadd.f32 %v3568_v59, %v3559_v10  ;;  %v3587_v46 = vadd.f32 %v3576_v25, %v3561_v41  ;;  %v3560_v38 = vadd.f32 %v3513_v44, %v7178_v58  ;;  %v3562_v2 = vadd.f32 %v3554_v43, %v7232_v48  ;;  %v5872_v58 = vld [vmem:[%s7744_s15 + $0x2e8] ss:$16 sps:$4 sm:$0xff]  }
 0x415   : > { %v3515_v63 = vpop.f32.mrf.mxu0  ;;  %v3556_v17 = vpop.f32.mrf.mxu1  ;;  %v5917_v59 = vld [vmem:[%s7744_s15 + $0x1e8] ss:$16 sps:$4 sm:$0xff]  }
 0x416   : > { %v3586_v19 = vadd.f32 %v3572_v28, %v3560_v38  ;;  %v3588_v47 = vadd.f32 %v3580_v26, %v3562_v2  ;;  %v3589_v42 = vmax.f32 %v3585_v36, 0.0  ;;  %v3591_v15 = vmax.f32 %v3587_v46, 0.0  ;;  %v5920_v25 = vld [vmem:[%s7744_s15 + $0x3e8] ss:$16 sps:$4 sm:$0xff]   ;;  %v5931_v28 = vld [vmem:[%s7744_s15 + $0x1ac] ss:$16 sps:$4 sm:$0xff]  }
 0x417   : > { %v3516_v51 = vpop.f32.mrf.mxu0  ;;  %v3557_v27 = vpop.f32.mrf.mxu1  ;;  %v5923_v10 = vld [vmem:[%s7744_s15 + $0x1c8] ss:$16 sps:$4 sm:$0xff]   ;;  %v5934_v26 = vld [vmem:[%s7744_s15 + $0x3ac] ss:$16 sps:$4 sm:$0xff]  }
 0x418   : > { %v3590_v53 = vmax.f32 %v3586_v19, 0.0  ;;  %v3592_v62 = vmax.f32 %v3588_v47, 0.0  ;;  %v7395_v48 = vpack.c.bf16 %v3589_v42, %v3589_v42  ;;  %v7397_v13 = vpack.c.bf16 %v3591_v15, %v3591_v15  ;;  %v5926_v41 = vld [vmem:[%s7744_s15 + $0x3c8] ss:$16 sps:$4 sm:$0xff]   ;;  %v5937_v36 = vld [vmem:[%s7744_s15 + $0x18c] ss:$16 sps:$4 sm:$0xff]  }
 0x419   : > { %v5929_v44 = vld [vmem:[%s7744_s15 + $0x1a8] ss:$16 sps:$4 sm:$0xff]   ;;  %v5940_v46 = vld [vmem:[%s7744_s15 + $0x38c] ss:$16 sps:$4 sm:$0xff]  }
 0x41a   : > { %v3594_v30 = vpack.c.bf16 %v3590_v53, %v3590_v53  ;;  %v3596_v5 = vpack.c.bf16 %v3592_v62, %v3592_v62  ;;  %v5932_v43 = vld [vmem:[%s7744_s15 + $0x3a8] ss:$16 sps:$4 sm:$0xff]   ;;  %v5943_v63 = vld [vmem:[%s7744_s15 + $0x16c] ss:$16 sps:$4 sm:$0xff]  }
 0x41b   : > { %v5935_v38 = vld [vmem:[%s7744_s15 + $0x188] ss:$16 sps:$4 sm:$0xff]   ;;  %v5946_v17 = vld [vmem:[%s7744_s15 + $0x36c] ss:$16 sps:$4 sm:$0xff]  }
 0x41c   : > { %4419 = vmatprep.mubr.bf16.mxu0 %v3594_v30  ;;  %4460 = vmatprep.mubr.bf16.mxu1 %v3596_v5  ;;  %v5938_v2 = vld [vmem:[%s7744_s15 + $0x388] ss:$16 sps:$4 sm:$0xff]   ;;  %v5949_v42 = vld [vmem:[%s7744_s15 + $0x14c] ss:$16 sps:$4 sm:$0xff]  }
 0x41d   : > { %4420 = vmatmul.mubr.bf16.vlgmr.msra.gmra.mxu0 %v7395_v48  ;;  %4461 = vmatmul.mubr.bf16.vlgmr.msra.gmra.mxu1 %v7397_v13  ;;  %v5941_v19 = vld [vmem:[%s7744_s15 + $0x168] ss:$16 sps:$4 sm:$0xff]   ;;  %v5952_v15 = vld [vmem:[%s7744_s15 + $0x34c] ss:$16 sps:$4 sm:$0xff]  }
 0x41e   : > { %4470 = vmatpush1.bf16.msra.mxu0 %v5869_v40  ;;  %4511 = vmatpush1.bf16.msra.mxu1 %v5872_v58  ;;  %v5944_v47 = vld [vmem:[%s7744_s15 + $0x368] ss:$16 sps:$4 sm:$0xff]   ;;  %v5955_v53 = vld [vmem:[%s7744_s15 + $0x12c] ss:$16 sps:$4 sm:$0xff]  }
 0x41f   : > { %4501 = vmatprep.mubr.bf16.mxu0 %v3594_v30  ;;  %4542 = vmatprep.mubr.bf16.mxu1 %v3596_v5  ;;  %v5947_v51 = vld [vmem:[%s7744_s15 + $0x148] ss:$16 sps:$4 sm:$0xff]   ;;  %v5958_v62 = vld [vmem:[%s7744_s15 + $0x32c] ss:$16 sps:$4 sm:$0xff]  }
 0x420   : > { %4471 = vmatprep.subr.bf16.mxu0 %v5877_v29  ;;  %4512 = vmatprep.subr.bf16.mxu1 %v5880_v11  ;;  %v5950_v27 = vld [vmem:[%s7744_s15 + $0x348] ss:$16 sps:$4 sm:$0xff]   ;;  %v5961_v40 = vld [vmem:[%s7744_s15 + $0x10c] ss:$16 sps:$4 sm:$0xff]  }
 0x421   : > { %v5953_v30 = vld [vmem:[%s7744_s15 + $0x128] ss:$16 sps:$4 sm:$0xff]   ;;  %v5964_v58 = vld [vmem:[%s7744_s15 + $0x30c] ss:$16 sps:$4 sm:$0xff]  }
 0x422   : > { %4472 = vmatpush1.bf16.msra.mxu0 %v5875_v32  ;;  %4513 = vmatpush1.bf16.msra.mxu1 %v5878_v8  ;;  %v5956_v5 = vld [vmem:[%s7744_s15 + $0x328] ss:$16 sps:$4 sm:$0xff]  }
 0x423   : > { %4473 = vmatprep.subr.bf16.mxu0 %v5883_v3  ;;  %4514 = vmatprep.subr.bf16.mxu1 %v5886_v33  ;;  %v5959_v29 = vld [vmem:[%s7744_s15 + $0x108] ss:$16 sps:$4 sm:$0xff]   ;;  %v5967_v3 = vld [vmem:[%s7746_s17 + $0x70] sm:$0xff]  }
 0x424   : > { %v5962_v11 = vld [vmem:[%s7744_s15 + $0x308] ss:$16 sps:$4 sm:$0xff]   ;;  %v5968_v33 = vld [vmem:[%s7746_s17 + $0x30] sm:$0xff]  }
 0x425   : > { %v5965_v32 = vld [vmem:[%s7746_s17 + $0x78] sm:$0xff]  }
 0x426   : > { %4474 = vmatpush1.bf16.msra.mxu0 %v5881_v24  ;;  %4515 = vmatpush1.bf16.msra.mxu1 %v5884_v7  ;;  %v5966_v8 = vld [vmem:[%s7746_s17 + $0x38] sm:$0xff]   ;;  %v5969_v24 = vld [vmem:[%s7746_s17 + $0x68] sm:$0xff]  }
 0x427   : > { %4475 = vmatprep.subr.bf16.mxu0 %v5889_v1  ;;  %4516 = vmatprep.subr.bf16.mxu1 %v5892_v20  ;;  %v5970_v7 = vld [vmem:[%s7746_s17 + $0x28] sm:$0xff]   ;;  %v5973_v1 = vld [vmem:[%s7746_s17 + $0x58] sm:$0xff]  }
 0x428   : > { %v5981_v20 = vld [vmem:[%s7746_s17 + $0xf8] sm:$0xff]  }
 0x42a   : > { %4476 = vmatpush1.bf16.msra.mxu0 %v5887_v18  ;;  %4517 = vmatpush1.bf16.msra.mxu1 %v5890_v60  ;;  %v5982_v18 = vld [vmem:[%s7746_s17 + $0xb8] sm:$0xff]   ;;  %v5983_v60 = vld [vmem:[%s7746_s17 + $0xf0] sm:$0xff]  }
 0x42b   : > { %4477 = vmatprep.subr.bf16.mxu0 %v5895_v9  ;;  %4518 = vmatprep.subr.bf16.mxu1 %v5898_v21  ;;  %v5974_v9 = vld [vmem:[%s7746_s17 + $0x18] sm:$0xff]   ;;  %v5975_v21 = vld [vmem:[%s7746_s17 + $0x50] sm:$0xff]  }
 0x42e   : > { %4478 = vmatpush1.bf16.msra.mxu0 %v5893_v14  ;;  %4519 = vmatpush1.bf16.msra.mxu1 %v5896_v0  ;;  %v5984_v14 = vld [vmem:[%s7746_s17 + $0xb0] sm:$0xff]   ;;  %v5985_v0 = vld [vmem:[%s7746_s17 + $0xe8] sm:$0xff]  }
 0x42f   : > { %4479 = vmatprep.subr.bf16.mxu0 %v5901_v52  ;;  %4520 = vmatprep.subr.bf16.mxu1 %v5904_v4  ;;  %v5976_v52 = vld [vmem:[%s7746_s17 + $0x10] sm:$0xff]   ;;  %v5977_v4 = vld [vmem:[%s7746_s17 + $0x48] sm:$0xff]  }
 0x432   : > { %4480 = vmatpush1.bf16.msra.mxu0 %v5899_v22  ;;  %4521 = vmatpush1.bf16.msra.mxu1 %v5902_v45  ;;  %v5986_v22 = vld [vmem:[%s7746_s17 + $0xa8] sm:$0xff]   ;;  %v5987_v45 = vld [vmem:[%s7746_s17 + $0xe0] sm:$0xff]  }
 0x433   : > { %4481 = vmatprep.subr.bf16.mxu0 %v5907_v31  ;;  %4522 = vmatprep.subr.bf16.mxu1 %v5910_v57  ;;  %v5978_v31 = vld [vmem:[%s7746_s17 + $0x8] sm:$0xff]   ;;  %v5979_v57 = vld [vmem:[%s7746_s17 + $0x40] sm:$0xff]  }
 0x436   : > { %4482 = vmatpush1.bf16.msra.mxu0 %v5905_v6  ;;  %4523 = vmatpush1.bf16.msra.mxu1 %v5908_v49  ;;  %v5988_v6 = vld [vmem:[%s7746_s17 + $0xa0] sm:$0xff]   ;;  %v5989_v49 = vld [vmem:[%s7746_s17 + $0xd8] sm:$0xff]  }
 0x437   : > { %4483 = vmatprep.subr.bf16.mxu0 %v5913_v23  ;;  %4524 = vmatprep.subr.bf16.mxu1 %v5916_v55  ;;  %v5980_v23 = vld [vmem:[%s7746_s17] sm:$0xff]   ;;  %v5990_v55 = vld [vmem:[%s7746_s17 + $0x98] sm:$0xff]  }
 0x43a   : > { %4484 = vmatpush1.bf16.msra.mxu0 %v5911_v12  ;;  %4525 = vmatpush1.bf16.msra.mxu1 %v5914_v61  ;;  %v5991_v12 = vld [vmem:[%s7746_s17 + $0xd0] sm:$0xff]  }
 0x43b   : > { %4485 = vmatprep.subr.bf16.mxu0 %v5919_v56  ;;  %4526 = vmatprep.subr.bf16.mxu1 %v5922_v54  ;;  %v5992_v61 = vld [vmem:[%s7746_s17 + $0x90] sm:$0xff]   ;;  %v5993_v56 = vld [vmem:[%s7746_s17 + $0xc8] sm:$0xff]  }
 0x43c   : > { %v5994_v54 = vld [vmem:[%s7746_s17 + $0x88] sm:$0xff]  }
 0x43e   : > { %4486 = vmatpush2.bf16.msra.mxu0 %v5917_v59  ;;  %4527 = vmatpush2.bf16.msra.mxu1 %v5920_v25  ;;  %v5995_v59 = vld [vmem:[%s7746_s17 + $0xc0] sm:$0xff]  }
 0x43f   : > { %4487 = vmatprep.subr.bf16.mxu0 %v5925_v50  ;;  %4528 = vmatprep.subr.bf16.mxu1 %v5928_v16  ;;  %v5996_v25 = vld [vmem:[%s7746_s17 + $0x80] sm:$0xff]  }
 0x440   : > { %v3725_v50 = vld [vmem:[%s7745_s16] sm:$0xf] }
 0x441   : > { %v3730_v16 = vrot.slane %v3725_v50, %v6468_v37  ;;  %v3742_v37 = vrot.slane %v3725_v50, %v6465_v35 }
 0x442   : > { %4488 = vmatpush2.bf16.msra.mxu0 %v5923_v10  ;;  %4529 = vmatpush2.bf16.msra.mxu1 %v5926_v41  ;;  %v3734_v10 = vrot.slane %v3725_v50, %v6462_v34  ;;  %v3738_v34 = vrot.slane %v3725_v50, %v6471_v39 }
 0x443   : > { %4489 = vmatprep.subr.bf16.mxu0 %v5931_v28  ;;  %4530 = vmatprep.subr.bf16.mxu1 %v5934_v26 }
 0x446   : > { %4490 = vmatpush2.bf16.msra.mxu0 %v5929_v44  ;;  %4531 = vmatpush2.bf16.msra.mxu1 %v5932_v43 }
 0x447   : > { %4491 = vmatprep.subr.bf16.mxu0 %v5937_v36  ;;  %4532 = vmatprep.subr.bf16.mxu1 %v5940_v46 }
 0x44a   : > { %4492 = vmatpush2.bf16.msra.mxu0 %v5935_v38  ;;  %4533 = vmatpush2.bf16.msra.mxu1 %v5938_v2 }
 0x44b   : > { %4493 = vmatprep.subr.bf16.mxu0 %v5943_v63  ;;  %4534 = vmatprep.subr.bf16.mxu1 %v5946_v17 }
 0x44e   : > { %4494 = vmatpush2.bf16.msra.mxu0 %v5941_v19  ;;  %4535 = vmatpush2.bf16.msra.mxu1 %v5944_v47 }
 0x44f   : > { %4495 = vmatprep.subr.bf16.mxu0 %v5949_v42  ;;  %4536 = vmatprep.subr.bf16.mxu1 %v5952_v15 }
 0x452   : > { %4496 = vmatpush2.bf16.msra.mxu0 %v5947_v51  ;;  %4537 = vmatpush2.bf16.msra.mxu1 %v5950_v27 }
 0x453   : > { %4497 = vmatprep.subr.bf16.mxu0 %v5955_v53  ;;  %4538 = vmatprep.subr.bf16.mxu1 %v5958_v62 }
 0x456   : > { %4498 = vmatpush2.bf16.msra.mxu0 %v5953_v30  ;;  %4539 = vmatpush2.bf16.msra.mxu1 %v5956_v5 }
 0x457   : > { %4499 = vmatprep.subr.bf16.mxu0 %v5961_v40  ;;  %4540 = vmatprep.subr.bf16.mxu1 %v5964_v58 }
 0x45a   : > { %4500 = vmatpush2.bf16.msra.mxu0 %v5959_v29  ;;  %4541 = vmatpush2.bf16.msra.mxu1 %v5962_v11 }
 0x45b   : > { %5432 = vmatprep.subr.bf16.mxu0 %v5965_v32  ;;  %5454 = vmatprep.subr.bf16.mxu1 %v5981_v20 }
 0x45d   : > { %4502 = vmatmul.mubr.bf16.vlgmr.msra.gmra.mxu0 %v7395_v48  ;;  %4543 = vmatmul.mubr.bf16.vlgmr.msra.gmra.mxu1 %v7397_v13  ;;  %v5971_v48 = vld [vmem:[%s7746_s17 + $0x60] sm:$0xff]  }
 0x45e   : > { %5433 = vmatpush3.bf16.msra.mxu0 %v5966_v8  ;;  %v5972_v13 = vld [vmem:[%s7746_s17 + $0x20] sm:$0xff]   ;;  %5455 = vmatpush3.bf16.msra.mxu1 %v5982_v18 }
 0x45f   : > { %5434 = vmatprep.subr.bf16.mxu0 %v5967_v3  ;;  %5456 = vmatprep.subr.bf16.mxu1 %v5983_v60  ;;  %v5351_v18 = vld [vmem:[%s7779_s2] ss:$0 sm:$0xff] }
 0x462   : > { %5435 = vmatpush3.bf16.msra.mxu0 %v5968_v33  ;;  %5457 = vmatpush3.bf16.msra.mxu1 %v5984_v14 }
 0x463   : > { %5436 = vmatprep.subr.bf16.mxu0 %v5969_v24  ;;  %5458 = vmatprep.subr.bf16.mxu1 %v5985_v0 }
 0x466   : > { %5437 = vmatpush3.bf16.msra.mxu0 %v5970_v7  ;;  %5459 = vmatpush3.bf16.msra.mxu1 %v5986_v22 }
 0x467   : > { %5438 = vmatprep.subr.bf16.mxu0 %v5971_v48  ;;  %5460 = vmatprep.subr.bf16.mxu1 %v5987_v45 }
 0x46a   : > { %5439 = vmatpush3.bf16.msra.mxu0 %v5972_v13  ;;  %5461 = vmatpush3.bf16.msra.mxu1 %v5988_v6 }
 0x46b   : > { %5440 = vmatprep.subr.bf16.mxu0 %v5973_v1  ;;  %5462 = vmatprep.subr.bf16.mxu1 %v5989_v49 }
 0x46e   : > { %5441 = vmatpush3.bf16.msra.mxu0 %v5974_v9  ;;  %5463 = vmatpush3.bf16.msra.mxu1 %v5990_v55 }
 0x46f   : > { %5442 = vmatprep.subr.bf16.mxu0 %v5975_v21  ;;  %5464 = vmatprep.subr.bf16.mxu1 %v5991_v12 }
 0x472   : > { %5443 = vmatpush3.bf16.msra.mxu0 %v5976_v52  ;;  %5465 = vmatpush3.bf16.msra.mxu1 %v5992_v61 }
 0x473   : > { %5444 = vmatprep.subr.bf16.mxu0 %v5977_v4  ;;  %5466 = vmatprep.subr.bf16.mxu1 %v5993_v56 }
 0x476   : > { %5445 = vmatpush3.bf16.msra.mxu0 %v5978_v31  ;;  %5467 = vmatpush3.bf16.msra.mxu1 %v5994_v54 }
 0x477   : > { %5446 = vmatprep.subr.bf16.mxu0 %v5979_v57  ;;  %5468 = vmatprep.subr.bf16.mxu1 %v5995_v59 }
 0x47a   : > { %5447 = vmatpush3.bf16.msra.mxu0 %v5980_v23  ;;  %5469 = vmatpush3.bf16.msra.mxu1 %v5996_v25 }
 0x4dd   : > { %v4421_v41 = vpop.f32.mrf.mxu0  ;;  %v4462_v28 = vpop.f32.mrf.mxu1 }
 0x4de   : > { %v4422_v26 = vadd.f32 %v4421_v41, %v3730_v16 }
 0x4df   : > { %v4423_v44 = vpop.f32.mrf.mxu0  ;;  %v4464_v43 = vpop.f32.mrf.mxu1 }
 0x4e0   : > { %v4463_v36 = vadd.f32 %v4462_v28, %v4422_v26  ;;  %v4424_v46 = vadd.f32 %v4423_v44, %v3734_v10 }
 0x4e1   : > { %v4425_v38 = vpop.f32.mrf.mxu0  ;;  %v4466_v2 = vpop.f32.mrf.mxu1 }
 0x4e2   : > { %v4465_v63 = vadd.f32 %v4464_v43, %v4424_v46  ;;  %v4551_v17 = vmax.f32 %v4463_v36, 0.0 }
 0x4e3   : > { %v4426_v19 = vpop.f32.mrf.mxu0  ;;  %v4467_v47 = vpop.f32.mrf.mxu1 }
 0x4e4   : > { %v4552_v42 = vmax.f32 %v4465_v63, 0.0  ;;  %v4555_v51 = vpack.c.bf16 %v4551_v17, %v4551_v17 }
 0x4e6   : > { %v4556_v15 = vpack.c.bf16 %v4552_v42, %v4552_v42 }
 0x4e8   : > { %4854 = vmatprep.mubr.bf16.mxu0 %v4556_v15 }
 0x4e9   : > { %4855 = vmatmul.mubr.bf16.vlgmr.msra.gmra.mxu0 %v4555_v51 }
 0x51d   : > { %v4503_v27 = vpop.f32.mrf.mxu0  ;;  %v4544_v53 = vpop.f32.mrf.mxu1 }
 0x51e   : > { %v4504_v62 = vadd.f32 %v4503_v27, %v3738_v34 }
 0x51f   : > { %v4505_v30 = vpop.f32.mrf.mxu0  ;;  %v4546_v5 = vpop.f32.mrf.mxu1 }
 0x520   : > { %v4545_v40 = vadd.f32 %v4544_v53, %v4504_v62  ;;  %v4506_v58 = vadd.f32 %v4505_v30, %v3742_v37 }
 0x521   : > { %v4507_v29 = vpop.f32.mrf.mxu0  ;;  %v4548_v11 = vpop.f32.mrf.mxu1 }
 0x522   : > { %v4547_v32 = vadd.f32 %v4546_v5, %v4506_v58  ;;  %v4553_v8 = vmax.f32 %v4545_v40, 0.0 }
 0x523   : > { %v4508_v3 = vpop.f32.mrf.mxu0  ;;  %v4549_v33 = vpop.f32.mrf.mxu1 }
 0x524   : > { %v4554_v24 = vmax.f32 %v4547_v32, 0.0  ;;  %v4557_v39 = vpack.c.bf16 %v4553_v8, %v4553_v8 }
 0x526   : > { %v4558_v7 = vpack.c.bf16 %v4554_v24, %v4554_v24 }
 0x528   : > { %4894 = vmatprep.mubr.bf16.mxu1 %v4558_v7 }
 0x529   : > { %4895 = vmatmul.mubr.bf16.vlgmr.msra.gmra.mxu1 %v4557_v39 }
 0x5a9   : > { %v5448_v35 = vpop.f32.mrf.mxu0 }
 0x5ab   : > { %v5449_v48 = vpop.f32.mrf.mxu0 }
 0x5ac   : > { %v5450_v20 = vadd.f32 %v5449_v48, %v5448_v35 }
 0x5ad   : > { %v5451_v13 = vpop.f32.mrf.mxu0 }
 0x5ae   : > { %v4857_v21 = vadd.f32 %v5450_v20, %v5351_v18 }
 0x5af   : > { %v5452_v1 = vpop.f32.mrf.mxu0 }
 0x5e9   : > { %v5470_v60 = vpop.f32.mrf.mxu1 }
 0x5eb   : > { %v5471_v9 = vpop.f32.mrf.mxu1 }
 0x5ec   : > { %v5472_v14 = vadd.f32 %v5471_v9, %v5470_v60 }
 0x5ed   : > { %v5473_v0 = vpop.f32.mrf.mxu1 }
 0x5ee   : > { %v4897_v52 = vadd.f32 %v5472_v14, %v4857_v21 }
 0x5ef   : > { %v5474_v4 = vpop.f32.mrf.mxu1 }
 0x5f0   : > { %4902 = vst [vmem:[%s638_s29] sm:$0xff] %v4897_v52 }
 0x5f1   : > { %6010 = shalt.err (!%p6007_p4)
}
 0x5f2   : > { %s6011_s19 = scalar_lea.hbm %s7694_s18, 128  ;;  %s6015_s2 = scalar_lea.hbm %s7781_s5, 256 }
 0x5f3   : > { %p6012_p7 = scmp.ne.s32.totalorder %s7694_s18, %s6011_s19  ;;  %p6016_p10 = scmp.lt.s32.totalorder %s7694_s18, %s7781_s5 }
 0x5f4   : > { %p6017_p11 = scmp.lt.s32.totalorder %s6015_s2, %s6011_s19 }
 0x5f5   : > { %p6013_p8 = pnand %p6012_p7, %p6200_p5 }
 0x5f6   : > { %p6018_p12 = por %p6017_p11, %p6016_p10 }
 0x5f7   : > { %p6014_p9 = pneg %p6013_p8 }
 0x5f9   : > { %p6019_p13 = pnand %p6018_p12, %p6014_p9 }
 0x5fb   : > { %6022 = shalt.err (!%p6019_p13)
}
 0x5fc   : > { %5476 = dma.vmem_to_hbm [thread:$0]  (%p6200_p5), %s4918_s22, 128, %s7694_s18, %s4904_s21  }
 0x5fd PF: > { %s7782_s26 = sld [smem:[#allocation7_spill]] }
 0x5fe   : > { %s7783_s23 = sld [smem:[#allocation5_spill]] }
 0x603   : > { %p5482_p0 = scmp.ge.s32.totalorder %s7782_s26, 2 }
 0x604   : > { %s4929_s1 = sand.u32 1, %s7783_s23  }
 0x605   : > { %p5479_p1 = pnand %p5482_p0, %p6204_p6  ;;  %s4930_s3 = scalar_lea.sflag [#allocation3], %s4929_s1 }
 0x607   : > { %p5480_p2 = pneg %p5479_p1 }
 0x609   : > { %6040 = dma.done.wait (%p5480_p2), %s4930_s3, 128  }
 0x60a   : > { %6042 = vsyncadd (%p5480_p2), %s4930_s3, 4294967168  ;;  %s7785_s21 = sld [smem:[#allocation8_spill]]  ;;  %s7788_s0 = smov %s6049_s30 }
 0x60b   : > { %s7786_s24 = sld [smem:[#allocation6_spill]] }
 0x60c   : > { %s7787_s20 = sld [smem:[#allocation9_spill]] }
 0x610   : > { %p29_p3 = scmp.ge.s32.totalorder %s7785_s21, 4  }
 0x611   : > { %s7789_s30 = smov %s7786_s24 }
 0x612   :  { %31 = sbr.rel (!%p29_p3) target bundleno = 11 (0xb), region = 140 }
 0x617   :  { %4935 = vsyncpa [#allocation3], 1 }
 0x618   :  { %4937 = vsyncpa [#allocation3 + $0x1], 1 }

</bundles_post_ra>
